<compile_context>
chip_gen: v6e
topology: v6e:2x2x1
jax: 0.10.0
libtpu: 0.0.40
codegen_flags: <defaults>
</compile_context>

<pallas_src>
import functools

import jax
import jax.numpy as jnp
from jax.experimental import pallas as pl
from jax.experimental.pallas import tpu as pltpu


# ----------------------------------------------------------------------------
# Kernel A: share conv (as matmul over im2col patches) + ReLU, chained with the
#           concatenated 1x1 branch extractors + ReLU.   All weights resident.
# ----------------------------------------------------------------------------
def _share_branch_kernel(cols_ref, ws_ref, bs_ref, we_ref, be_ref, o_ref):
    # cols: (TM, C*9) bf16   ws: (C*9, Cs) bf16   bs: (1, Cs) f32
    # we:   (Cs, 3*Cb) bf16  be: (1, 3*Cb) f32    o: (TM, 3*Cb) f32
    share = jnp.dot(cols_ref[...], ws_ref[...], preferred_element_type=jnp.float32)
    share = jnp.maximum(share + bs_ref[...], 0.0)
    y = jnp.dot(share.astype(we_ref.dtype), we_ref[...],
                preferred_element_type=jnp.float32)
    y = jnp.maximum(y + be_ref[...], 0.0)
    o_ref[...] = y.astype(o_ref.dtype)


def share_branch_forward(cols, ws, bs, we, be):
    M, K = cols.shape
    Cs = ws.shape[1]
    Ct = we.shape[1]
    # Two grid steps over the pixel axis when it is big enough: lets v7x's two
    # TensorCores split the work; otherwise a single full-array block.
    if M >= 256 and M % 16 == 0:
        TM = M // 2
    else:
        TM = M
    grid = (M // TM,)
    return pl.pallas_call(
        _share_branch_kernel,
        out_shape=jax.ShapeDtypeStruct((M, Ct), jnp.float32),
        grid=grid,
        in_specs=[
            pl.BlockSpec((TM, K), lambda i: (i, 0)),
            pl.BlockSpec((K, Cs), lambda i: (0, 0)),
            pl.BlockSpec((1, Cs), lambda i: (0, 0)),
            pl.BlockSpec((Cs, Ct), lambda i: (0, 0)),
            pl.BlockSpec((1, Ct), lambda i: (0, 0)),
        ],
        out_specs=pl.BlockSpec((TM, Ct), lambda i: (i, 0)),
        compiler_params=pltpu.CompilerParams(
            dimension_semantics=("parallel",)),
    )(cols, ws, bs, we, be)


# ----------------------------------------------------------------------------
# Kernel B: all three head MLPs fused.
#   latent (N, H*W*3Cb) @ W1_cat (.., 3*hd) + b1 -> ReLU
#   -> @ W2_blockdiag (3*hd, 2*ad+1) + b2 -> sigmoid on the mask columns.
# ----------------------------------------------------------------------------
def _heads_kernel(action_dim, x_ref, w1_ref, b1_ref, w2_ref, b2_ref, o_ref):
    h = jnp.dot(x_ref[...], w1_ref[...], preferred_element_type=jnp.float32)
    h = jnp.maximum(h + b1_ref[...], 0.0)
    y = jnp.dot(h.astype(w2_ref.dtype), w2_ref[...],
                preferred_element_type=jnp.float32)
    y = y + b2_ref[...]
    col = jax.lax.broadcasted_iota(jnp.int32, y.shape, 1)
    y = jnp.where(col < action_dim, jax.nn.sigmoid(y), y)
    o_ref[...] = y.astype(o_ref.dtype)


def heads_forward(x, w1, b1, w2, b2, action_dim):
    N, K = x.shape
    Hd = w1.shape[1]
    Do = w2.shape[1]
    return pl.pallas_call(
        functools.partial(_heads_kernel, action_dim),
        out_shape=jax.ShapeDtypeStruct((N, Do), jnp.float32),
        grid=(1,),
        in_specs=[
            pl.BlockSpec((N, K), lambda i: (0, 0)),
            pl.BlockSpec((K, Hd), lambda i: (0, 0)),
            pl.BlockSpec((1, Hd), lambda i: (0, 0)),
            pl.BlockSpec((Hd, Do), lambda i: (0, 0)),
            pl.BlockSpec((1, Do), lambda i: (0, 0)),
        ],
        out_specs=pl.BlockSpec((N, Do), lambda i: (0, 0)),
        compiler_params=pltpu.CompilerParams(
            dimension_semantics=("arbitrary",)),
    )(x, w1, b1, w2, b2)


# ----------------------------------------------------------------------------
# Plain-JAX glue (fused by XLA under jit)
# ----------------------------------------------------------------------------
def _im2col_3x3(x_nchw):
    """3x3 / stride 1 / pad 1 patches -> (N*H*W, C*9), PyTorch weight ordering."""
    N, C, H, W = x_nchw.shape
    xp = jnp.pad(x_nchw, ((0, 0), (0, 0), (1, 1), (1, 1)))
    patches = [xp[:, :, dh:dh + H, dw:dw + W]
               for dh in range(3) for dw in range(3)]
    cols = jnp.stack(patches, axis=2)          # (N, C, 9, H, W), idx = kh*3+kw
    cols = cols.transpose(0, 3, 4, 1, 2)       # (N, H, W, C, 9)
    return cols.reshape(N * H * W, C * 9)      # K index = c*9 + kh*3 + kw


def _forward_impl(params, obs, *, H, W, c_branch, action_dim, normalize_images):
    obs = obs.astype(jnp.float32)
    if normalize_images:
        obs = obs / 255.0
    N = obs.shape[0]
    ad = action_dim

    # Kernel A: 3x3 share conv + ReLU fused with all three 1x1 extractors+ReLU.
    cols = _im2col_3x3(obs).astype(jnp.bfloat16)             # (N*H*W, C*9)
    feat = share_branch_forward(cols, params["ws"], params["bs"],
                                params["we"], params["be"])  # (N*H*W, 3*Cb)

    # Pure reshape into per-sample NHWC-flatten over all branch channels.
    latent = feat.reshape(N, H * W * 3 * c_branch).astype(jnp.bfloat16)

    # Kernel B: all three head MLPs in one fused call.
    out = heads_forward(latent, params["w1"], params["b1"],
                        params["w2"], params["b2"], ad)       # (N, 2*ad+1)

    mask_probs = out[:, :ad]
    action_logits = out[:, ad:2 * ad]
    values = out[:, 2 * ad:2 * ad + 1]
    return mask_probs, action_logits, values


# ----------------------------------------------------------------------------
# BaseNetwork (concrete synthetic instantiation)
# ----------------------------------------------------------------------------
class BaseNetworkPallas:
    def __init__(self, obs_shape, action_dim, hidden_dim=32,
                 c_share=16, c_branch=8, normalize_images=False, seed=0):
        C, H, W = obs_shape
        self.obs_shape = obs_shape
        self.action_dim = action_dim
        self.hidden_dim = hidden_dim
        self.normalize_images = normalize_images
        self.n_flatten = c_branch * H * W
        HW = H * W
        Cb, hd, ad, nf = c_branch, hidden_dim, action_dim, self.n_flatten

        key = jax.random.PRNGKey(seed)
        ks = jax.random.split(key, 16)

        def w(k, shape, scale=0.05):
            return (scale * jax.random.normal(k, shape)).astype(jnp.float32)

        # ---- raw PyTorch-layout weights -------------------------------------
        w_share = w(ks[0], (c_share, C, 3, 3))
        b_share = w(ks[1], (c_share,))

        w_mask_ex, b_mask_ex = w(ks[2], (Cb, c_share, 1, 1)), w(ks[3], (Cb,))
        w_actor_ex, b_actor_ex = w(ks[4], (Cb, c_share, 1, 1)), w(ks[5], (Cb,))
        w_critic_ex, b_critic_ex = w(ks[6], (Cb, c_share, 1, 1)), w(ks[7], (Cb,))

        w_mk1, b_mk1 = w(ks[8], (nf, hd)), jnp.zeros((hd,), jnp.float32)
        w_mk2, b_mk2 = w(ks[9], (hd, ad)), jnp.zeros((ad,), jnp.float32)
        w_pi1, b_pi1 = w(ks[10], (nf, hd)), jnp.zeros((hd,), jnp.float32)
        w_pi2, b_pi2 = w(ks[11], (hd, ad)), jnp.zeros((ad,), jnp.float32)
        w_vf1, b_vf1 = w(ks[12], (nf, hd)), jnp.zeros((hd,), jnp.float32)
        w_vf2, b_vf2 = w(ks[13], (hd, 1)), jnp.zeros((1,), jnp.float32)

        # ---- one-time fusion / re-layout ------------------------------------
        # 3x3 share conv as (C*9, Cs) matmul weight (K index = c*9 + kh*3 + kw).
        ws = w_share.reshape(c_share, C * 9).T.astype(jnp.bfloat16)
        bs = b_share.reshape(1, c_share)

        # Concatenate the three 1x1 extractors: (Cs, 3*Cb), channels [mk|pi|vf].
        we = jnp.concatenate(
            [w_mask_ex.reshape(Cb, c_share).T,
             w_actor_ex.reshape(Cb, c_share).T,
             w_critic_ex.reshape(Cb, c_share).T], axis=1).astype(jnp.bfloat16)
        be = jnp.concatenate([b_mask_ex, b_actor_ex, b_critic_ex]).reshape(1, 3 * Cb)

        # First head layer: permute rows from PyTorch NCHW-flatten order into the
        # NHWC-over-all-branches order produced by kernel A, and embed each
        # branch into its own column block -> (HW*3*Cb, 3*hd).
        def head1_block(w1, branch):
            wb = w1.reshape(Cb, HW, hd).transpose(1, 0, 2)    # (HW, Cb, hd)
            full = jnp.zeros((HW, Cb, 3 * hd), jnp.float32)
            return full.at[:, :, branch * hd:(branch + 1) * hd].set(wb)

        w1_cat = jnp.concatenate(
            [head1_block(w_mk1, 0), head1_block(w_pi1, 1), head1_block(w_vf1, 2)],
            axis=1).reshape(HW * 3 * Cb, 3 * hd).astype(jnp.bfloat16)
        b1_cat = jnp.concatenate([b_mk1, b_pi1, b_vf1]).reshape(1, 3 * hd)

        # Second head layer: block-diagonal (3*hd, 2*ad+1), cols [mask|logits|value].
        out_dim = 2 * ad + 1
        w2_cat = jnp.zeros((3 * hd, out_dim), jnp.float32)
        w2_cat = w2_cat.at[0:hd, 0:ad].set(w_mk2)
        w2_cat = w2_cat.at[hd:2 * hd, ad:2 * ad].set(w_pi2)
        w2_cat = w2_cat.at[2 * hd:3 * hd, 2 * ad:2 * ad + 1].set(w_vf2)
        w2_cat = w2_cat.astype(jnp.bfloat16)
        b2_cat = jnp.concatenate([b_mk2, b_pi2, b_vf2]).reshape(1, out_dim)

        self.params = dict(ws=ws, bs=bs, we=we, be=be,
                           w1=w1_cat, b1=b1_cat, w2=w2_cat, b2=b2_cat)

        self._fwd = jax.jit(functools.partial(
            _forward_impl, H=H, W=W, c_branch=Cb, action_dim=ad,
            normalize_images=normalize_images))

    def forward(self, observations):
        """observations: (N, C, H, W) -> (mask_probs, action_logits, values)."""
        return self._fwd(self.params, observations)


# ----------------------------------------------------------------------------
if __name__ == "__main__":
    batch, C, H, W = 2, 4, 16, 16
    action_dim = 6

    key = jax.random.PRNGKey(0)
    observations = jax.random.normal(key, (batch, C, H, W), dtype=jnp.float32)

    net = BaseNetworkPallas((C, H, W), action_dim=action_dim, hidden_dim=32)

    mask_probs, action_logits, values = net.forward(observations)
    jax.block_until_ready((mask_probs, action_logits, values))

    assert mask_probs.shape == (batch, action_dim)
    assert action_logits.shape == (batch, action_dim)
    assert values.shape == (batch, 1)
    assert bool(jnp.all((mask_probs >= 0.0) & (mask_probs <= 1.0)))
    assert bool(jnp.all(jnp.isfinite(action_logits)))
    assert bool(jnp.all(jnp.isfinite(values)))

    print("KERNEL_OK")
</pallas_src>

<mosaic_0001>
module attributes {stable_mosaic.version = 11 : i64} {
  func.func @_share_branch_kernel(%arg0: i32, %arg1: memref<256x36xbf16, #tpu.memory_space<vmem>>, %arg2: memref<36x16xbf16, #tpu.memory_space<vmem>>, %arg3: memref<1x16xf32, #tpu.memory_space<vmem>>, %arg4: memref<16x24xbf16, #tpu.memory_space<vmem>>, %arg5: memref<1x24xf32, #tpu.memory_space<vmem>>, %arg6: memref<256x24xf32, #tpu.memory_space<vmem>>) attributes {dimension_semantics = [#tpu.dimension_semantics<parallel>], iteration_bounds = array<i64: 2>, scalar_prefetch = 0 : i64, scratch_operands = 0 : i64, tpu.core_type = #tpu.core_type<tc>, window_params = [{transform_indices = @transform_0, window_bounds = array<i64: 256, 36>}, {pipeline_mode = #tpu.pipeline_mode<synchronous>, transform_indices = @transform_1, window_bounds = array<i64: 36, 16>}, {pipeline_mode = #tpu.pipeline_mode<synchronous>, transform_indices = @transform_2, window_bounds = array<i64: 1, 16>}, {pipeline_mode = #tpu.pipeline_mode<synchronous>, transform_indices = @transform_3, window_bounds = array<i64: 16, 24>}, {pipeline_mode = #tpu.pipeline_mode<synchronous>, transform_indices = @transform_4, window_bounds = array<i64: 1, 24>}, {transform_indices = @transform_5, window_bounds = array<i64: 256, 24>}]} {
    %c0 = arith.constant 0 : index
    %c0_0 = arith.constant 0 : index
    %0 = vector.load %arg1[%c0, %c0_0] : memref<256x36xbf16, #tpu.memory_space<vmem>>, vector<256x36xbf16>
    %c0_1 = arith.constant 0 : index
    %c0_2 = arith.constant 0 : index
    %1 = vector.load %arg2[%c0_1, %c0_2] : memref<36x16xbf16, #tpu.memory_space<vmem>>, vector<36x16xbf16>
    %cst = arith.constant dense<0.000000e+00> : vector<256x16xf32>
    %2 = tpu.matmul %0, %1, %cst {dimension_numbers = #tpu.dot_dimension_numbers<[1], [0], [0], [1], [0, 0, 1, 1], [], []>} : vector<256x36xbf16>, vector<36x16xbf16>, vector<256x16xf32> -> vector<256x16xf32>
    %c0_3 = arith.constant 0 : index
    %c0_4 = arith.constant 0 : index
    %3 = vector.load %arg3[%c0_3, %c0_4] : memref<1x16xf32, #tpu.memory_space<vmem>>, vector<1x16xf32>
    %4 = vector.broadcast %3 : vector<1x16xf32> to vector<256x16xf32>
    %5 = arith.addf %2, %4 : vector<256x16xf32>
    %cst_5 = arith.constant 0.000000e+00 : f32
    %6 = vector.broadcast %cst_5 : f32 to vector<256x16xf32>
    %7 = arith.maximumf %5, %6 : vector<256x16xf32>
    %8 = arith.truncf %7 : vector<256x16xf32> to vector<256x16xbf16>
    %c0_6 = arith.constant 0 : index
    %c0_7 = arith.constant 0 : index
    %9 = vector.load %arg4[%c0_6, %c0_7] : memref<16x24xbf16, #tpu.memory_space<vmem>>, vector<16x24xbf16>
    %cst_8 = arith.constant dense<0.000000e+00> : vector<256x24xf32>
    %10 = tpu.matmul %8, %9, %cst_8 {dimension_numbers = #tpu.dot_dimension_numbers<[1], [0], [0], [1], [0, 0, 1, 1], [], []>} : vector<256x16xbf16>, vector<16x24xbf16>, vector<256x24xf32> -> vector<256x24xf32>
    %c0_9 = arith.constant 0 : index
    %c0_10 = arith.constant 0 : index
    %11 = vector.load %arg5[%c0_9, %c0_10] : memref<1x24xf32, #tpu.memory_space<vmem>>, vector<1x24xf32>
    %12 = vector.broadcast %11 : vector<1x24xf32> to vector<256x24xf32>
    %13 = arith.addf %10, %12 : vector<256x24xf32>
    %cst_11 = arith.constant 0.000000e+00 : f32
    %14 = vector.broadcast %cst_11 : f32 to vector<256x24xf32>
    %15 = arith.maximumf %13, %14 : vector<256x24xf32>
    %c0_12 = arith.constant 0 : index
    %c0_13 = arith.constant 0 : index
    %16 = vector.load %arg6[%c0_12, %c0_13] : memref<256x24xf32, #tpu.memory_space<vmem>>, vector<256x24xf32>
    tpu.vector_store %arg6[%c0_12, %c0_13], %15 {strides = array<i32>} : memref<256x24xf32, #tpu.memory_space<vmem>>, vector<256x24xf32>,
    return
  }
  func.func @transform_0(%arg0: i32) -> (i32, i32) {
    %c0_i32 = arith.constant 0 : i32
    %c0_i32_0 = arith.constant 0 : i32
    return %arg0, %c0_i32 : i32, i32
  }
  func.func @transform_1(%arg0: i32) -> (i32, i32) {
    %c0_i32 = arith.constant 0 : i32
    %c0_i32_0 = arith.constant 0 : i32
    %c0_i32_1 = arith.constant 0 : i32
    return %c0_i32, %c0_i32_0 : i32, i32
  }
  func.func @transform_2(%arg0: i32) -> (i32, i32) {
    %c0_i32 = arith.constant 0 : i32
    %c0_i32_0 = arith.constant 0 : i32
    %c0_i32_1 = arith.constant 0 : i32
    return %c0_i32, %c0_i32_0 : i32, i32
  }
  func.func @transform_3(%arg0: i32) -> (i32, i32) {
    %c0_i32 = arith.constant 0 : i32
    %c0_i32_0 = arith.constant 0 : i32
    %c0_i32_1 = arith.constant 0 : i32
    return %c0_i32, %c0_i32_0 : i32, i32
  }
  func.func @transform_4(%arg0: i32) -> (i32, i32) {
    %c0_i32 = arith.constant 0 : i32
    %c0_i32_0 = arith.constant 0 : i32
    %c0_i32_1 = arith.constant 0 : i32
    return %c0_i32, %c0_i32_0 : i32, i32
  }
  func.func @transform_5(%arg0: i32) -> (i32, i32) {
    %c0_i32 = arith.constant 0 : i32
    %c0_i32_0 = arith.constant 0 : i32
    return %arg0, %c0_i32 : i32, i32
  }
}

module attributes {stable_mosaic.version = 11 : i64} {
  func.func @_heads_kernel(%arg0: i32, %arg1: memref<2x6144xbf16, #tpu.memory_space<vmem>>, %arg2: memref<6144x96xbf16, #tpu.memory_space<vmem>>, %arg3: memref<1x96xf32, #tpu.memory_space<vmem>>, %arg4: memref<96x13xbf16, #tpu.memory_space<vmem>>, %arg5: memref<1x13xf32, #tpu.memory_space<vmem>>, %arg6: memref<2x13xf32, #tpu.memory_space<vmem>>) attributes {dimension_semantics = [#tpu.dimension_semantics<arbitrary>], iteration_bounds = array<i64: 1>, scalar_prefetch = 0 : i64, scratch_operands = 0 : i64, tpu.core_type = #tpu.core_type<tc>, window_params = [{pipeline_mode = #tpu.pipeline_mode<synchronous>, transform_indices = @transform_0, window_bounds = array<i64: 2, 6144>}, {pipeline_mode = #tpu.pipeline_mode<synchronous>, transform_indices = @transform_1, window_bounds = array<i64: 6144, 96>}, {pipeline_mode = #tpu.pipeline_mode<synchronous>, transform_indices = @transform_2, window_bounds = array<i64: 1, 96>}, {pipeline_mode = #tpu.pipeline_mode<synchronous>, transform_indices = @transform_3, window_bounds = array<i64: 96, 13>}, {pipeline_mode = #tpu.pipeline_mode<synchronous>, transform_indices = @transform_4, window_bounds = array<i64: 1, 13>}, {pipeline_mode = #tpu.pipeline_mode<synchronous>, transform_indices = @transform_5, window_bounds = array<i64: 2, 13>}]} {
    %c0 = arith.constant 0 : index
    %c0_0 = arith.constant 0 : index
    %0 = vector.load %arg1[%c0, %c0_0] : memref<2x6144xbf16, #tpu.memory_space<vmem>>, vector<2x6144xbf16>
    %c0_1 = arith.constant 0 : index
    %c0_2 = arith.constant 0 : index
    %1 = vector.load %arg2[%c0_1, %c0_2] : memref<6144x96xbf16, #tpu.memory_space<vmem>>, vector<6144x96xbf16>
    %cst = arith.constant dense<0.000000e+00> : vector<2x96xf32>
    %2 = tpu.matmul %0, %1, %cst {dimension_numbers = #tpu.dot_dimension_numbers<[1], [0], [0], [1], [0, 0, 1, 1], [], []>} : vector<2x6144xbf16>, vector<6144x96xbf16>, vector<2x96xf32> -> vector<2x96xf32>
    %c0_3 = arith.constant 0 : index
    %c0_4 = arith.constant 0 : index
    %3 = vector.load %arg3[%c0_3, %c0_4] : memref<1x96xf32, #tpu.memory_space<vmem>>, vector<1x96xf32>
    %4 = vector.broadcast %3 : vector<1x96xf32> to vector<2x96xf32>
    %5 = arith.addf %2, %4 : vector<2x96xf32>
    %cst_5 = arith.constant 0.000000e+00 : f32
    %6 = vector.broadcast %cst_5 : f32 to vector<2x96xf32>
    %7 = arith.maximumf %5, %6 : vector<2x96xf32>
    %8 = arith.truncf %7 : vector<2x96xf32> to vector<2x96xbf16>
    %c0_6 = arith.constant 0 : index
    %c0_7 = arith.constant 0 : index
    %9 = vector.load %arg4[%c0_6, %c0_7] : memref<96x13xbf16, #tpu.memory_space<vmem>>, vector<96x13xbf16>
    %cst_8 = arith.constant dense<0.000000e+00> : vector<2x13xf32>
    %10 = tpu.matmul %8, %9, %cst_8 {dimension_numbers = #tpu.dot_dimension_numbers<[1], [0], [0], [1], [0, 0, 1, 1], [], []>} : vector<2x96xbf16>, vector<96x13xbf16>, vector<2x13xf32> -> vector<2x13xf32>
    %c0_9 = arith.constant 0 : index
    %c0_10 = arith.constant 0 : index
    %11 = vector.load %arg5[%c0_9, %c0_10] : memref<1x13xf32, #tpu.memory_space<vmem>>, vector<1x13xf32>
    %12 = vector.broadcast %11 : vector<1x13xf32> to vector<2x13xf32>
    %13 = arith.addf %10, %12 : vector<2x13xf32>
    %14 = tpu.iota {dimensions = array<i32: 1>} : vector<2x13xi32>
    %c6_i32 = arith.constant 6 : i32
    %15 = vector.broadcast %c6_i32 : i32 to vector<2x13xi32>
    %16 = arith.cmpi slt, %14, %15 : vector<2x13xi32>
    %17 = arith.negf %13 : vector<2x13xf32>
    %18 = math.exp %17 : vector<2x13xf32>
    %cst_11 = arith.constant 1.000000e+00 : f32
    %19 = vector.broadcast %cst_11 : f32 to vector<2x13xf32>
    %20 = arith.addf %19, %18 : vector<2x13xf32>
    %21 = arith.divf %19, %20 : vector<2x13xf32>
    %22 = arith.select %16, %21, %13 : vector<2x13xi1>, vector<2x13xf32>
    %c0_12 = arith.constant 0 : index
    %c0_13 = arith.constant 0 : index
    %23 = vector.load %arg6[%c0_12, %c0_13] : memref<2x13xf32, #tpu.memory_space<vmem>>, vector<2x13xf32>
    tpu.vector_store %arg6[%c0_12, %c0_13], %22 {strides = array<i32>} : memref<2x13xf32, #tpu.memory_space<vmem>>, vector<2x13xf32>,
    return
  }
  func.func @transform_0(%arg0: i32) -> (i32, i32) {
    %c0_i32 = arith.constant 0 : i32
    %c0_i32_0 = arith.constant 0 : i32
    %c0_i32_1 = arith.constant 0 : i32
    return %c0_i32, %c0_i32_0 : i32, i32
  }
  func.func @transform_1(%arg0: i32) -> (i32, i32) {
    %c0_i32 = arith.constant 0 : i32
    %c0_i32_0 = arith.constant 0 : i32
    %c0_i32_1 = arith.constant 0 : i32
    return %c0_i32, %c0_i32_0 : i32, i32
  }
  func.func @transform_2(%arg0: i32) -> (i32, i32) {
    %c0_i32 = arith.constant 0 : i32
    %c0_i32_0 = arith.constant 0 : i32
    %c0_i32_1 = arith.constant 0 : i32
    return %c0_i32, %c0_i32_0 : i32, i32
  }
  func.func @transform_3(%arg0: i32) -> (i32, i32) {
    %c0_i32 = arith.constant 0 : i32
    %c0_i32_0 = arith.constant 0 : i32
    %c0_i32_1 = arith.constant 0 : i32
    return %c0_i32, %c0_i32_0 : i32, i32
  }
  func.func @transform_4(%arg0: i32) -> (i32, i32) {
    %c0_i32 = arith.constant 0 : i32
    %c0_i32_0 = arith.constant 0 : i32
    %c0_i32_1 = arith.constant 0 : i32
    return %c0_i32, %c0_i32_0 : i32, i32
  }
  func.func @transform_5(%arg0: i32) -> (i32, i32) {
    %c0_i32 = arith.constant 0 : i32
    %c0_i32_0 = arith.constant 0 : i32
    %c0_i32_1 = arith.constant 0 : i32
    return %c0_i32, %c0_i32_0 : i32, i32
  }
}

</mosaic_0001>

<bundles_post_ra>
// kernel: _forward_impl.2
= control target key start
LH: loop header
LB: loop body
LE: loop exit
PB: predicated region body
PF: predicated region fallthrough
CT: control target
= control target key end

     0   :  { %s1216_s18 = smov 0   ;;  %s1439_s0 = inlined_call_operand.vmem [shape: bf16[512,36], index: 0, kind: input, shape index: {}]   ;;  %s1440_s1 = inlined_call_operand.vmem [shape: bf16[36,16], index: 1, kind: input, shape index: {}]   ;;  %s1441_s2 = inlined_call_operand.vmem [shape: f32[1,16], index: 2, kind: input, shape index: {}]   ;;  %s1442_s3 = inlined_call_operand.vmem [shape: bf16[16,24], index: 3, kind: input, shape index: {}]   ;;  %s1443_s4 = inlined_call_operand.vmem [shape: f32[1,24], index: 4, kind: input, shape index: {}]   ;;  %s1444_s5 = inlined_call_operand.vmem [shape: f32[512,24], index: 5, kind: output, shape index: {}]  }
   0x1 LB: > { %s976_s19 = sadd.s32 4294967295, %s1184_s18   ;;  %p980_p0 = scmp.ge.s32.totalorder %s1184_s18, 1  ;;  %s1184_s18 = sphi %s1216_s18, %s15_s18  }
   0x2   : > { %p188_p1 = scmp.lt.s32.totalorder %s1184_s18, 3 }
   0x4   : > { %p189_p2 = pnand %p980_p0, %p188_p1 }
   0x5   : > { %s981_s24 = sshll.u32 (!%p189_p2), %s976_s19, 5 }
   0x6   : > { %192 = sbr.rel (%p189_p2) target bundleno = 490 (0x1ea), region = 40  ;;  %p217_p3 = scmp.lt.s32.totalorder (!%p189_p2), %s981_s24, 63 }
   0xb   : > { %v1158_v0 = vld [vmem:[%s1440_s1 + $0x10] ss:$0 sps:$4 sm:$0x33]   ;;  %vm417_vm0 = vcmask 1041408   ;;  %v1159_v1 = vld [vmem:[%s1440_s1 + $0x8] sm:$0xff]   ;;  %v1160_v3 = vld [vmem:[%s1440_s1] sm:$0xff]  }
   0xc   : > { %1149 = vmatprep.subr.msk.bf16.mxu0 %vm417_vm0, %v1158_v0  ;;  %v419_v2 = vsel %vm417_vm0, %v1158_v0, 0  ;;  %s1446_s24 = smov (!%p217_p3, %s981_s24), 63  ;;  %vm368_vm1 = vcmask 293888   ;;  %v1177_v20 = vld [vmem:[%s1442_s3] sm:$0xff]   ;;  %vm645_vm2 = vcmask 130048   ;;  %vm887_vm3 = vcmask 195584  }
   0xd   : > { %1078 = vmatpush3.bf16.msra.mxu0 %v419_v2  ;;  %s982_s27 = sshll.u32 %s1446_s24, 2  ;;  %1115 = vmatprep.subr.bf16.mxu1 %v1177_v20  ;;  %v1279_v23 = vld [vmem:[%s1441_s2] ss:$0 sm:$0xff]  ;;  %s984_s12 = sshll.u32 %s1446_s24, 3 }
   0xe   : > { %1079 = vmatprep.subr.bf16.mxu0 %v1159_v1  ;;  %s1239_s30 = scalar_lea.vmem %s1439_s0, %s982_s27  ;;  %1116 = vmatpush3.bf16.msra.mxu1 %v1177_v20  ;;  %s1339_s15 = scalar_lea.vmem %s1444_s5, %s984_s12 }
   0xf   : > { %v1161_v4 = vld [vmem:[%s1239_s30] sm:$0xff]   ;;  %v1162_v5 = vld [vmem:[%s1239_s30 + $0x8] sm:$0xff]   ;;  %v1163_v6 = vld [vmem:[%s1239_s30 + $0x10] sm:$0xff]  }
  0x10   : > { %1083 = vmatprep.mubr.msk.bf16.mxu0 %vm368_vm1, %v1161_v4  ;;  %v1164_v7 = vld [vmem:[%s1239_s30 + $0x18] sm:$0xff]   ;;  %v1165_v8 = vld [vmem:[%s1239_s30 + $0x20] sm:$0xff]   ;;  %v1166_v9 = vld [vmem:[%s1239_s30 + $0x28] sm:$0xff]  }
  0x11   : > { %1080 = vmatpush3.bf16.msra.mxu0 %v1159_v1  ;;  %v1167_v10 = vld [vmem:[%s1239_s30 + $0x30] sm:$0xff]   ;;  %v1168_v11 = vld [vmem:[%s1239_s30 + $0x38] sm:$0xff]   ;;  %v1169_v12 = vld [vmem:[%s1239_s30 + $0x40] sm:$0xff]  }
  0x12   : > { %1081 = vmatprep.subr.bf16.mxu0 %v1160_v3  ;;  %v1170_v13 = vld [vmem:[%s1239_s30 + $0x48] sm:$0xff]   ;;  %v1171_v14 = vld [vmem:[%s1239_s30 + $0x50] sm:$0xff]   ;;  %v1172_v15 = vld [vmem:[%s1239_s30 + $0x58] sm:$0xff]  }
  0x13   : > { %v1173_v16 = vld [vmem:[%s1239_s30 + $0x60] sm:$0xff]   ;;  %v1174_v17 = vld [vmem:[%s1239_s30 + $0x68] sm:$0xff]   ;;  %v1175_v18 = vld [vmem:[%s1239_s30 + $0x70] sm:$0xff]  }
  0x14   : > { %v1176_v19 = vld [vmem:[%s1239_s30 + $0x78] sm:$0xff]  }
  0x15   : > { %1082 = vmatpush3.bf16.msra.mxu0 %v1160_v3 }
  0x18   : > { %1084 = vmatmul.mubr.msk.bf16.vlgmr.msra.gmra.mxu0 %vm368_vm1, %v1162_v5 }
  0x19   : > { %1087 = vmatprep.mubr.msk.bf16.mxu0 %vm368_vm1, %v1163_v6 }
  0x20   : > { %1088 = vmatmul.mubr.msk.bf16.gmra.mxu0 %vm368_vm1, %v1164_v7 }
  0x21   : > { %1091 = vmatprep.mubr.msk.bf16.mxu0 %vm368_vm1, %v1165_v8 }
  0x28   : > { %1092 = vmatmul.mubr.msk.bf16.gmra.mxu0 %vm368_vm1, %v1166_v9 }
  0x29   : > { %1095 = vmatprep.mubr.msk.bf16.mxu0 %vm368_vm1, %v1167_v10 }
  0x30   : > { %1096 = vmatmul.mubr.msk.bf16.gmra.mxu0 %vm368_vm1, %v1168_v11 }
  0x31   : > { %1099 = vmatprep.mubr.msk.bf16.mxu0 %vm368_vm1, %v1169_v12 }
  0x38   : > { %1100 = vmatmul.mubr.msk.bf16.gmra.mxu0 %vm368_vm1, %v1170_v13 }
  0x39   : > { %1103 = vmatprep.mubr.msk.bf16.mxu0 %vm368_vm1, %v1171_v14 }
  0x40   : > { %1104 = vmatmul.mubr.msk.bf16.gmra.mxu0 %vm368_vm1, %v1172_v15 }
  0x41   : > { %1107 = vmatprep.mubr.msk.bf16.mxu0 %vm368_vm1, %v1173_v16 }
  0x48   : > { %1108 = vmatmul.mubr.msk.bf16.gmra.mxu0 %vm368_vm1, %v1174_v17 }
  0x49   : > { %1111 = vmatprep.mubr.msk.bf16.mxu0 %vm368_vm1, %v1175_v18 }
  0x50   : > { %1112 = vmatmul.mubr.msk.bf16.gmra.mxu0 %vm368_vm1, %v1176_v19 }
  0xd8   : > { %v1085_v21 = vpop.f32.mrf.mxu0 }
  0xd9   : > { %v464_v27 = vadd.f32 %v1085_v21, %v1279_v23 }
  0xda   : > { %v455_v22 = vpop.f32.mrf.mxu0 }
  0xdb   : > { %v456_v25 = vadd.f32 %v1279_v23, %v455_v22  ;;  %v584_v34 = vmax.f32 %v464_v27, 0.0 }
  0xdc   : > { %v1086_v24 = vpop.f32.mrf.mxu0 }
  0xdd   : > { %v467_v26 = vadd.f32 %v1086_v24, %v1279_v23  ;;  %v582_v32 = vmax.f32 %v456_v25, 0.0 }
  0xde   : > { %v458_v28 = vpop.f32.mrf.mxu0 }
  0xdf   : > { %v459_v29 = vadd.f32 %v1279_v23, %v458_v28  ;;  %v585_v30 = vmax.f32 %v467_v26, 0.0 }
  0xe0   : > { %v1089_v31 = vpop.f32.mrf.mxu0 }
  0xe1   : > { %v583_v33 = vmax.f32 %v459_v29, 0.0  ;;  %v615_v37 = vpack.c.bf16 %v585_v30, %v584_v34  ;;  %v480_v41 = vadd.f32 %v1089_v31, %v1279_v23 }
  0xe2   : > { %v471_v35 = vpop.f32.mrf.mxu0 }
  0xe3   : > { %v614_v36 = vpack.c.bf16 %v583_v33, %v582_v32  ;;  %v472_v39 = vadd.f32 %v1279_v23, %v471_v35  ;;  %v588_v48 = vmax.f32 %v480_v41, 0.0 }
  0xe4   : > { %v1090_v38 = vpop.f32.mrf.mxu0 }
  0xe5   : > { %v483_v40 = vadd.f32 %v1090_v38, %v1279_v23  ;;  %1117 = vmatprep.mubr.msk.bf16.mxu1 %vm645_vm2, %v614_v36  ;;  %v586_v46 = vmax.f32 %v472_v39, 0.0 }
  0xe6   : > { %v474_v42 = vpop.f32.mrf.mxu0  ;;  %1118 = vmatmul.mubr.msk.bf16.vlgmr.msra.gmra.mxu1 %vm645_vm2, %v615_v37 }
  0xe7   : > { %v475_v43 = vadd.f32 %v1279_v23, %v474_v42  ;;  %v589_v44 = vmax.f32 %v483_v40, 0.0 }
  0xe8   : > { %v1093_v45 = vpop.f32.mrf.mxu0 }
  0xe9   : > { %v587_v47 = vmax.f32 %v475_v43, 0.0  ;;  %v617_v51 = vpack.c.bf16 %v589_v44, %v588_v48  ;;  %v496_v55 = vadd.f32 %v1093_v45, %v1279_v23 }
  0xea   : > { %v487_v49 = vpop.f32.mrf.mxu0 }
  0xeb   : > { %v616_v50 = vpack.c.bf16 %v587_v47, %v586_v46  ;;  %v488_v53 = vadd.f32 %v1279_v23, %v487_v49  ;;  %v592_v62 = vmax.f32 %v496_v55, 0.0 }
  0xec   : > { %v1094_v52 = vpop.f32.mrf.mxu0 }
  0xed   : > { %v499_v54 = vadd.f32 %v1094_v52, %v1279_v23  ;;  %1121 = vmatprep.mubr.msk.bf16.mxu1 %vm645_vm2, %v616_v50  ;;  %v590_v60 = vmax.f32 %v488_v53, 0.0 }
  0xee   : > { %v490_v56 = vpop.f32.mrf.mxu0  ;;  %1122 = vmatmul.mubr.msk.bf16.gmra.mxu1 %vm645_vm2, %v617_v51 }
  0xef   : > { %v491_v57 = vadd.f32 %v1279_v23, %v490_v56  ;;  %v593_v58 = vmax.f32 %v499_v54, 0.0 }
  0xf0   : > { %v1097_v59 = vpop.f32.mrf.mxu0 }
  0xf1   : > { %v591_v61 = vmax.f32 %v491_v57, 0.0  ;;  %v619_v1 = vpack.c.bf16 %v593_v58, %v592_v62  ;;  %v512_v5 = vadd.f32 %v1097_v59, %v1279_v23 }
  0xf2   : > { %v503_v63 = vpop.f32.mrf.mxu0 }
  0xf3   : > { %v618_v0 = vpack.c.bf16 %v591_v61, %v590_v60  ;;  %v504_v3 = vadd.f32 %v1279_v23, %v503_v63  ;;  %v596_v12 = vmax.f32 %v512_v5, 0.0 }
  0xf4   : > { %v1098_v2 = vpop.f32.mrf.mxu0 }
  0xf5   : > { %v515_v4 = vadd.f32 %v1098_v2, %v1279_v23  ;;  %1125 = vmatprep.mubr.msk.bf16.mxu1 %vm645_vm2, %v618_v0  ;;  %v594_v10 = vmax.f32 %v504_v3, 0.0 }
  0xf6   : > { %v506_v6 = vpop.f32.mrf.mxu0  ;;  %1126 = vmatmul.mubr.msk.bf16.gmra.mxu1 %vm645_vm2, %v619_v1 }
  0xf7   : > { %v507_v7 = vadd.f32 %v1279_v23, %v506_v6  ;;  %v597_v8 = vmax.f32 %v515_v4, 0.0 }
  0xf8   : > { %v1101_v9 = vpop.f32.mrf.mxu0 }
  0xf9   : > { %v595_v11 = vmax.f32 %v507_v7, 0.0  ;;  %v621_v15 = vpack.c.bf16 %v597_v8, %v596_v12  ;;  %v528_v19 = vadd.f32 %v1101_v9, %v1279_v23  ;;  %v1332_v7 = vld [vmem:[%s1443_s4] ss:$0 sm:$0xff] }
  0xfa   : > { %v519_v13 = vpop.f32.mrf.mxu0 }
  0xfb   : > { %v620_v14 = vpack.c.bf16 %v595_v11, %v594_v10  ;;  %v520_v17 = vadd.f32 %v1279_v23, %v519_v13  ;;  %v600_v27 = vmax.f32 %v528_v19, 0.0 }
  0xfc   : > { %v1102_v16 = vpop.f32.mrf.mxu0 }
  0xfd   : > { %v531_v18 = vadd.f32 %v1102_v16, %v1279_v23  ;;  %1129 = vmatprep.mubr.msk.bf16.mxu1 %vm645_vm2, %v620_v14  ;;  %v598_v25 = vmax.f32 %v520_v17, 0.0 }
  0xfe   : > { %v522_v20 = vpop.f32.mrf.mxu0  ;;  %1130 = vmatmul.mubr.msk.bf16.gmra.mxu1 %vm645_vm2, %v621_v15 }
  0xff   : > { %v523_v21 = vadd.f32 %v1279_v23, %v522_v20  ;;  %v601_v22 = vmax.f32 %v531_v18, 0.0 }
 0x100   : > { %v1105_v24 = vpop.f32.mrf.mxu0 }
 0x101   : > { %v599_v26 = vmax.f32 %v523_v21, 0.0  ;;  %v623_v30 = vpack.c.bf16 %v601_v22, %v600_v27  ;;  %v544_v34 = vadd.f32 %v1105_v24, %v1279_v23 }
 0x102   : > { %v535_v28 = vpop.f32.mrf.mxu0 }
 0x103   : > { %v622_v29 = vpack.c.bf16 %v599_v26, %v598_v25  ;;  %v536_v32 = vadd.f32 %v1279_v23, %v535_v28  ;;  %v604_v41 = vmax.f32 %v544_v34, 0.0 }
 0x104   : > { %v1106_v31 = vpop.f32.mrf.mxu0 }
 0x105   : > { %v547_v33 = vadd.f32 %v1106_v31, %v1279_v23  ;;  %1133 = vmatprep.mubr.msk.bf16.mxu1 %vm645_vm2, %v622_v29  ;;  %v602_v39 = vmax.f32 %v536_v32, 0.0 }
 0x106   : > { %v538_v35 = vpop.f32.mrf.mxu0  ;;  %1134 = vmatmul.mubr.msk.bf16.gmra.mxu1 %vm645_vm2, %v623_v30 }
 0x107   : > { %v539_v36 = vadd.f32 %v1279_v23, %v538_v35  ;;  %v605_v37 = vmax.f32 %v547_v33, 0.0 }
 0x108   : > { %v1109_v38 = vpop.f32.mrf.mxu0 }
 0x109   : > { %v603_v40 = vmax.f32 %v539_v36, 0.0  ;;  %v625_v44 = vpack.c.bf16 %v605_v37, %v604_v41  ;;  %v560_v48 = vadd.f32 %v1109_v38, %v1279_v23 }
 0x10a   : > { %v551_v42 = vpop.f32.mrf.mxu0 }
 0x10b   : > { %v624_v43 = vpack.c.bf16 %v603_v40, %v602_v39  ;;  %v552_v46 = vadd.f32 %v1279_v23, %v551_v42  ;;  %v608_v55 = vmax.f32 %v560_v48, 0.0 }
 0x10c   : > { %v1110_v45 = vpop.f32.mrf.mxu0 }
 0x10d   : > { %v563_v47 = vadd.f32 %v1110_v45, %v1279_v23  ;;  %1137 = vmatprep.mubr.msk.bf16.mxu1 %vm645_vm2, %v624_v43  ;;  %v606_v53 = vmax.f32 %v552_v46, 0.0 }
 0x10e   : > { %v554_v49 = vpop.f32.mrf.mxu0  ;;  %1138 = vmatmul.mubr.msk.bf16.gmra.mxu1 %vm645_vm2, %v625_v44 }
 0x10f   : > { %v555_v50 = vadd.f32 %v1279_v23, %v554_v49  ;;  %v609_v51 = vmax.f32 %v563_v47, 0.0 }
 0x110   : > { %v1113_v52 = vpop.f32.mrf.mxu0 }
 0x111   : > { %v607_v54 = vmax.f32 %v555_v50, 0.0  ;;  %v627_v58 = vpack.c.bf16 %v609_v51, %v608_v55  ;;  %v576_v62 = vadd.f32 %v1113_v52, %v1279_v23 }
 0x112   : > { %v567_v56 = vpop.f32.mrf.mxu0 }
 0x113   : > { %v626_v57 = vpack.c.bf16 %v607_v54, %v606_v53  ;;  %v568_v60 = vadd.f32 %v1279_v23, %v567_v56  ;;  %v612_v4 = vmax.f32 %v576_v62, 0.0 }
 0x114   : > { %v1114_v59 = vpop.f32.mrf.mxu0 }
 0x115   : > { %v579_v61 = vadd.f32 %v1114_v59, %v1279_v23  ;;  %1141 = vmatprep.mubr.msk.bf16.mxu1 %vm645_vm2, %v626_v57  ;;  %v610_v2 = vmax.f32 %v568_v60, 0.0 }
 0x116   : > { %v570_v63 = vpop.f32.mrf.mxu0  ;;  %1142 = vmatmul.mubr.msk.bf16.gmra.mxu1 %vm645_vm2, %v627_v58 }
 0x117   : > { %v571_v0 = vadd.f32 %v1279_v23, %v570_v63  ;;  %v613_v1 = vmax.f32 %v579_v61, 0.0 }
 0x119   : > { %v611_v3 = vmax.f32 %v571_v0, 0.0  ;;  %v629_v6 = vpack.c.bf16 %v613_v1, %v612_v4 }
 0x11b   : > { %v628_v5 = vpack.c.bf16 %v611_v3, %v610_v2 }
 0x11d   : > { %1145 = vmatprep.mubr.msk.bf16.mxu1 %vm645_vm2, %v628_v5 }
 0x11e   : > { %1146 = vmatmul.mubr.msk.bf16.gmra.mxu1 %vm645_vm2, %v629_v6 }
 0x1a6   : > { %v1119_v8 = vpop.f32.mrf.mxu1 }
 0x1a7   : > { %v737_v9 = vadd.f32 %v1119_v8, %v1332_v7 }
 0x1a8   : > { %v728_v23 = vpop.f32.mrf.mxu1 }
 0x1a9   : > { %v857_v10 = vmax.f32 %v737_v9, 0.0  ;;  %v729_v11 = vadd.f32 %v1332_v7, %v728_v23 }
 0x1aa   : > { %v1120_v12 = vpop.f32.mrf.mxu1 }
 0x1ab   : > { %890 = vst.msk [vmem:[%s1339_s15 + $0x10] sm:$0xff] %vm887_vm3, %v857_v10  ;;  %v855_v13 = vmax.f32 %v729_v11, 0.0  ;;  %v740_v14 = vadd.f32 %v1120_v12, %v1332_v7 }
 0x1ac   : > { %v731_v15 = vpop.f32.mrf.mxu1 }
 0x1ad   : > { %888 = vst.msk [vmem:[%s1339_s15] sm:$0xff] %vm887_vm3, %v855_v13  ;;  %v858_v16 = vmax.f32 %v740_v14, 0.0  ;;  %v732_v17 = vadd.f32 %v1332_v7, %v731_v15 }
 0x1ae   : > { %v1123_v18 = vpop.f32.mrf.mxu1 }
 0x1af   : > { %891 = vst.msk [vmem:[%s1339_s15 + $0x18] sm:$0xff] %vm887_vm3, %v858_v16  ;;  %v856_v19 = vmax.f32 %v732_v17, 0.0  ;;  %v753_v20 = vadd.f32 %v1123_v18, %v1332_v7 }
 0x1b0   : > { %v744_v21 = vpop.f32.mrf.mxu1 }
 0x1b1   : > { %889 = vst.msk [vmem:[%s1339_s15 + $0x8] sm:$0xff] %vm887_vm3, %v856_v19  ;;  %v861_v22 = vmax.f32 %v753_v20, 0.0  ;;  %v745_v24 = vadd.f32 %v1332_v7, %v744_v21 }
 0x1b2   : > { %v1124_v25 = vpop.f32.mrf.mxu1 }
 0x1b3   : > { %894 = vst.msk [vmem:[%s1339_s15 + $0x30] sm:$0xff] %vm887_vm3, %v861_v22  ;;  %v859_v26 = vmax.f32 %v745_v24, 0.0  ;;  %v756_v27 = vadd.f32 %v1124_v25, %v1332_v7 }
 0x1b4   : > { %v747_v28 = vpop.f32.mrf.mxu1 }
 0x1b5   : > { %892 = vst.msk [vmem:[%s1339_s15 + $0x20] sm:$0xff] %vm887_vm3, %v859_v26  ;;  %v862_v29 = vmax.f32 %v756_v27, 0.0  ;;  %v748_v30 = vadd.f32 %v1332_v7, %v747_v28 }
 0x1b6   : > { %v1127_v31 = vpop.f32.mrf.mxu1 }
 0x1b7   : > { %895 = vst.msk [vmem:[%s1339_s15 + $0x38] sm:$0xff] %vm887_vm3, %v862_v29  ;;  %v860_v32 = vmax.f32 %v748_v30, 0.0  ;;  %v769_v33 = vadd.f32 %v1127_v31, %v1332_v7 }
 0x1b8   : > { %v760_v34 = vpop.f32.mrf.mxu1 }
 0x1b9   : > { %893 = vst.msk [vmem:[%s1339_s15 + $0x28] sm:$0xff] %vm887_vm3, %v860_v32  ;;  %v865_v35 = vmax.f32 %v769_v33, 0.0  ;;  %v761_v36 = vadd.f32 %v1332_v7, %v760_v34 }
 0x1ba   : > { %v1128_v37 = vpop.f32.mrf.mxu1 }
 0x1bb   : > { %898 = vst.msk [vmem:[%s1339_s15 + $0x50] sm:$0xff] %vm887_vm3, %v865_v35  ;;  %v863_v38 = vmax.f32 %v761_v36, 0.0  ;;  %v772_v39 = vadd.f32 %v1128_v37, %v1332_v7 }
 0x1bc   : > { %v763_v40 = vpop.f32.mrf.mxu1 }
 0x1bd   : > { %896 = vst.msk [vmem:[%s1339_s15 + $0x40] sm:$0xff] %vm887_vm3, %v863_v38  ;;  %v866_v41 = vmax.f32 %v772_v39, 0.0  ;;  %v764_v42 = vadd.f32 %v1332_v7, %v763_v40 }
 0x1be   : > { %v1131_v43 = vpop.f32.mrf.mxu1 }
 0x1bf   : > { %899 = vst.msk [vmem:[%s1339_s15 + $0x58] sm:$0xff] %vm887_vm3, %v866_v41  ;;  %v864_v44 = vmax.f32 %v764_v42, 0.0  ;;  %v785_v45 = vadd.f32 %v1131_v43, %v1332_v7 }
 0x1c0   : > { %v776_v46 = vpop.f32.mrf.mxu1 }
 0x1c1   : > { %897 = vst.msk [vmem:[%s1339_s15 + $0x48] sm:$0xff] %vm887_vm3, %v864_v44  ;;  %v869_v47 = vmax.f32 %v785_v45, 0.0  ;;  %v777_v48 = vadd.f32 %v1332_v7, %v776_v46 }
 0x1c2   : > { %v1132_v49 = vpop.f32.mrf.mxu1 }
 0x1c3   : > { %902 = vst.msk [vmem:[%s1339_s15 + $0x70] sm:$0xff] %vm887_vm3, %v869_v47  ;;  %v867_v50 = vmax.f32 %v777_v48, 0.0  ;;  %v788_v51 = vadd.f32 %v1132_v49, %v1332_v7 }
 0x1c4   : > { %v779_v52 = vpop.f32.mrf.mxu1 }
 0x1c5   : > { %900 = vst.msk [vmem:[%s1339_s15 + $0x60] sm:$0xff] %vm887_vm3, %v867_v50  ;;  %v870_v53 = vmax.f32 %v788_v51, 0.0  ;;  %v780_v54 = vadd.f32 %v1332_v7, %v779_v52 }
 0x1c6   : > { %v1135_v55 = vpop.f32.mrf.mxu1 }
 0x1c7   : > { %903 = vst.msk [vmem:[%s1339_s15 + $0x78] sm:$0xff] %vm887_vm3, %v870_v53  ;;  %v868_v56 = vmax.f32 %v780_v54, 0.0  ;;  %v801_v57 = vadd.f32 %v1135_v55, %v1332_v7 }
 0x1c8   : > { %v792_v58 = vpop.f32.mrf.mxu1 }
 0x1c9   : > { %901 = vst.msk [vmem:[%s1339_s15 + $0x68] sm:$0xff] %vm887_vm3, %v868_v56  ;;  %v873_v59 = vmax.f32 %v801_v57, 0.0  ;;  %v793_v60 = vadd.f32 %v1332_v7, %v792_v58 }
 0x1ca   : > { %v1136_v61 = vpop.f32.mrf.mxu1 }
 0x1cb   : > { %906 = vst.msk [vmem:[%s1339_s15 + $0x90] sm:$0xff] %vm887_vm3, %v873_v59  ;;  %v871_v62 = vmax.f32 %v793_v60, 0.0  ;;  %v804_v63 = vadd.f32 %v1136_v61, %v1332_v7 }
 0x1cc   : > { %v795_v0 = vpop.f32.mrf.mxu1 }
 0x1cd   : > { %904 = vst.msk [vmem:[%s1339_s15 + $0x80] sm:$0xff] %vm887_vm3, %v871_v62  ;;  %v874_v1 = vmax.f32 %v804_v63, 0.0  ;;  %v796_v2 = vadd.f32 %v1332_v7, %v795_v0 }
 0x1ce   : > { %v1139_v3 = vpop.f32.mrf.mxu1 }
 0x1cf   : > { %907 = vst.msk [vmem:[%s1339_s15 + $0x98] sm:$0xff] %vm887_vm3, %v874_v1  ;;  %v872_v4 = vmax.f32 %v796_v2, 0.0  ;;  %v817_v5 = vadd.f32 %v1139_v3, %v1332_v7 }
 0x1d0   : > { %v808_v6 = vpop.f32.mrf.mxu1 }
 0x1d1   : > { %905 = vst.msk [vmem:[%s1339_s15 + $0x88] sm:$0xff] %vm887_vm3, %v872_v4  ;;  %v877_v8 = vmax.f32 %v817_v5, 0.0  ;;  %v809_v9 = vadd.f32 %v1332_v7, %v808_v6 }
 0x1d2   : > { %v1140_v23 = vpop.f32.mrf.mxu1 }
 0x1d3   : > { %910 = vst.msk [vmem:[%s1339_s15 + $0xb0] sm:$0xff] %vm887_vm3, %v877_v8  ;;  %v875_v10 = vmax.f32 %v809_v9, 0.0  ;;  %v820_v11 = vadd.f32 %v1140_v23, %v1332_v7 }
 0x1d4   : > { %v811_v12 = vpop.f32.mrf.mxu1 }
 0x1d5   : > { %908 = vst.msk [vmem:[%s1339_s15 + $0xa0] sm:$0xff] %vm887_vm3, %v875_v10  ;;  %v878_v13 = vmax.f32 %v820_v11, 0.0  ;;  %v812_v14 = vadd.f32 %v1332_v7, %v811_v12 }
 0x1d6   : > { %v1143_v15 = vpop.f32.mrf.mxu1 }
 0x1d7   : > { %911 = vst.msk [vmem:[%s1339_s15 + $0xb8] sm:$0xff] %vm887_vm3, %v878_v13  ;;  %v876_v16 = vmax.f32 %v812_v14, 0.0  ;;  %v833_v17 = vadd.f32 %v1143_v15, %v1332_v7 }
 0x1d8   : > { %v824_v18 = vpop.f32.mrf.mxu1 }
 0x1d9   : > { %909 = vst.msk [vmem:[%s1339_s15 + $0xa8] sm:$0xff] %vm887_vm3, %v876_v16  ;;  %v881_v19 = vmax.f32 %v833_v17, 0.0  ;;  %v825_v20 = vadd.f32 %v1332_v7, %v824_v18 }
 0x1da   : > { %v1144_v21 = vpop.f32.mrf.mxu1 }
 0x1db   : > { %914 = vst.msk [vmem:[%s1339_s15 + $0xd0] sm:$0xff] %vm887_vm3, %v881_v19  ;;  %v879_v22 = vmax.f32 %v825_v20, 0.0  ;;  %v836_v24 = vadd.f32 %v1144_v21, %v1332_v7 }
 0x1dc   : > { %v827_v25 = vpop.f32.mrf.mxu1 }
 0x1dd   : > { %912 = vst.msk [vmem:[%s1339_s15 + $0xc0] sm:$0xff] %vm887_vm3, %v879_v22  ;;  %v882_v26 = vmax.f32 %v836_v24, 0.0  ;;  %v828_v27 = vadd.f32 %v1332_v7, %v827_v25 }
 0x1de   : > { %v1147_v28 = vpop.f32.mrf.mxu1 }
 0x1df   : > { %915 = vst.msk [vmem:[%s1339_s15 + $0xd8] sm:$0xff] %vm887_vm3, %v882_v26  ;;  %v880_v29 = vmax.f32 %v828_v27, 0.0  ;;  %v849_v30 = vadd.f32 %v1147_v28, %v1332_v7 }
 0x1e0   : > { %v840_v31 = vpop.f32.mrf.mxu1 }
 0x1e1   : > { %913 = vst.msk [vmem:[%s1339_s15 + $0xc8] sm:$0xff] %vm887_vm3, %v880_v29  ;;  %v885_v32 = vmax.f32 %v849_v30, 0.0  ;;  %v841_v33 = vadd.f32 %v1332_v7, %v840_v31 }
 0x1e2   : > { %v1148_v34 = vpop.f32.mrf.mxu1 }
 0x1e3   : > { %918 = vst.msk [vmem:[%s1339_s15 + $0xf0] sm:$0xff] %vm887_vm3, %v885_v32  ;;  %v883_v35 = vmax.f32 %v841_v33, 0.0  ;;  %v852_v36 = vadd.f32 %v1148_v34, %v1332_v7 }
 0x1e4   : > { %v843_v37 = vpop.f32.mrf.mxu1 }
 0x1e5   : > { %916 = vst.msk [vmem:[%s1339_s15 + $0xe0] sm:$0xff] %vm887_vm3, %v883_v35  ;;  %v886_v38 = vmax.f32 %v852_v36, 0.0  ;;  %v844_v39 = vadd.f32 %v1332_v7, %v843_v37 }
 0x1e7   : > { %919 = vst.msk [vmem:[%s1339_s15 + $0xf8] sm:$0xff] %vm887_vm3, %v886_v38  ;;  %v884_v40 = vmax.f32 %v844_v39, 0.0 }
 0x1e9   : > { %917 = vst.msk [vmem:[%s1339_s15 + $0xe8] sm:$0xff] %vm887_vm3, %v884_v40 }
 0x1ea PF: > { %s15_s18 = sadd.s32 1, %s1184_s18  }
 0x1eb   : > { %p12_p4 = scmp.ge.s32.totalorder %s15_s18, 4  }
 0x1ed   :  { %14 = sbr.rel (!%p12_p4) target bundleno = 1 (0x1), region = 70 }

// kernel: _forward_impl.3
= control target key start
LH: loop header
LB: loop body
LE: loop exit
PB: predicated region body
PF: predicated region fallthrough
CT: control target
= control target key end

     0   :  { %v5879_v22 = vmov 1966171168   ;;  %v812_v24 = vlaneseq  ;;  %vm5881_vm0 = vmmov 0   ;;  %vm4471_vm1 = vcmask 785408   ;;  %s7191_s1 = inlined_call_operand.vmem [shape: bf16[6144,96], index: 1, kind: input, shape index: {}]   ;;  %s7192_s0 = inlined_call_operand.vmem [shape: bf16[2,6144], index: 0, kind: input, shape index: {}]   ;;  %s7193_s2 = inlined_call_operand.vmem [shape: f32[1,96], index: 2, kind: input, shape index: {}]   ;;  %s7194_s3 = inlined_call_operand.vmem [shape: bf16[96,13], index: 3, kind: input, shape index: {}]   ;;  %s7195_s4 = inlined_call_operand.vmem [shape: f32[1,13], index: 4, kind: input, shape index: {}]   ;;  %s7196_s5 = inlined_call_operand.vmem [shape: f32[2,13], index: 5, kind: output, shape index: {}]  }
   0x1   :  { %v5479_v0 = vld [vmem:[%s7191_s1 + $0x78] sm:$0xff]   ;;  %v5483_v4 = vld [vmem:[%s7191_s1 + $0x70] sm:$0xff]   ;;  %v5487_v8 = vld [vmem:[%s7191_s1 + $0x68] sm:$0xff]   ;;  %v810_v23 = vunpack.c.l.s4 %v5879_v22  ;;  %vm4525_vm3 = vcmask 99328  }
   0x2   :  { %v5480_v1 = vld [vmem:[%s7191_s1 + $0xf8] sm:$0xff]   ;;  %4925 = vmatprep.subr.bf16.mxu0 %v5479_v0  ;;  %v5484_v5 = vld [vmem:[%s7191_s1 + $0xf0] sm:$0xff]   ;;  %v5488_v9 = vld [vmem:[%s7191_s1 + $0xe8] sm:$0xff]   ;;  %v813_v30 = vshrl.u32 %v812_v24, 7 }
   0x3   :  { %v5481_v2 = vld [vmem:[%s7191_s1 + $0x38] sm:$0xff]   ;;  %4947 = vmatprep.subr.bf16.mxu1 %v5480_v1  ;;  %v5485_v6 = vld [vmem:[%s7191_s1 + $0x30] sm:$0xff]   ;;  %v5489_v10 = vld [vmem:[%s7191_s1 + $0x28] sm:$0xff]   ;;  %v811_v29 = vunpack.c.0.s8 %v810_v23 }
   0x4   :  { %v5482_v3 = vld [vmem:[%s7191_s1 + $0xb8] sm:$0xff]   ;;  %4926 = vmatpush3.bf16.msra.mxu0 %v5481_v2  ;;  %v5486_v7 = vld [vmem:[%s7191_s1 + $0xb0] sm:$0xff]   ;;  %v5490_v11 = vld [vmem:[%s7191_s1 + $0xa8] sm:$0xff]  }
   0x5   :  { %4948 = vmatpush3.bf16.msra.mxu1 %v5482_v3  ;;  %4927 = vmatprep.subr.bf16.mxu0 %v5483_v4  ;;  %v5491_v12 = vld [vmem:[%s7191_s1 + $0x60] sm:$0xff]   ;;  %v5495_v16 = vld [vmem:[%s7191_s1 + $0x58] sm:$0xff]   ;;  %v5499_v20 = vld [vmem:[%s7191_s1 + $0x50] sm:$0xff]   ;;  %v6003_v35 = vsub.s32 %v811_v29, %v813_v30 }
   0x6   :  { %4949 = vmatprep.subr.bf16.mxu1 %v5484_v5  ;;  %v5492_v13 = vld [vmem:[%s7191_s1 + $0xe0] sm:$0xff]   ;;  %v5496_v17 = vld [vmem:[%s7191_s1 + $0xd8] sm:$0xff]   ;;  %v5500_v21 = vld [vmem:[%s7191_s1 + $0xd0] sm:$0xff]  }
   0x7   :  { %v5493_v14 = vld [vmem:[%s7191_s1 + $0x20] sm:$0xff]   ;;  %v5497_v18 = vld [vmem:[%s7191_s1 + $0x18] sm:$0xff]   ;;  %v5501_v25 = vld [vmem:[%s7191_s1 + $0x10] sm:$0xff]  }
   0x8   :  { %4928 = vmatpush3.bf16.msra.mxu0 %v5485_v6  ;;  %v5494_v15 = vld [vmem:[%s7191_s1 + $0xa0] sm:$0xff]   ;;  %v5498_v19 = vld [vmem:[%s7191_s1 + $0x98] sm:$0xff]   ;;  %v5502_v26 = vld [vmem:[%s7191_s1 + $0x90] sm:$0xff]  }
   0x9   :  { %4950 = vmatpush3.bf16.msra.mxu1 %v5486_v7  ;;  %4929 = vmatprep.subr.bf16.mxu0 %v5487_v8  ;;  %v5503_v27 = vld [vmem:[%s7191_s1 + $0x48] sm:$0xff]   ;;  %v5507_v33 = vld [vmem:[%s7191_s1 + $0x40] sm:$0xff]   ;;  %v5512_v41 = vld [vmem:[%s7191_s1 + $0x178] sm:$0xff]  }
   0xa   :  { %4951 = vmatprep.subr.bf16.mxu1 %v5488_v9  ;;  %v5504_v28 = vld [vmem:[%s7191_s1 + $0xc8] sm:$0xff]   ;;  %v5508_v34 = vld [vmem:[%s7191_s1 + $0xc0] sm:$0xff]   ;;  %v5513_v42 = vld [vmem:[%s7191_s1 + $0x1f8] sm:$0xff]  }
   0xb   :  { %v5505_v31 = vld [vmem:[%s7191_s1 + $0x8] sm:$0xff]   ;;  %v5509_v36 = vld [vmem:[%s7191_s1] sm:$0xff]   ;;  %v5514_v46 = vld [vmem:[%s7191_s1 + $0x138] sm:$0xff]  }
   0xc   :  { %4930 = vmatpush3.bf16.msra.mxu0 %v5489_v10  ;;  %v5506_v32 = vld [vmem:[%s7191_s1 + $0x88] sm:$0xff]   ;;  %v5510_v37 = vld [vmem:[%s7191_s1 + $0x80] sm:$0xff]   ;;  %v5515_v48 = vld [vmem:[%s7191_s1 + $0x1b8] sm:$0xff]  }
   0xd   :  { %4952 = vmatpush3.bf16.msra.mxu1 %v5490_v11  ;;  %4931 = vmatprep.subr.bf16.mxu0 %v5491_v12  ;;  %v21_v38 = vld [vmem:[%s7192_s0] sm:$0xff]  ;;  %v5516_v51 = vld [vmem:[%s7191_s1 + $0x170] sm:$0xff]   ;;  %v5520_v58 = vld [vmem:[%s7191_s1 + $0x168] sm:$0xff]  }
   0xe   :  { %4953 = vmatprep.subr.bf16.mxu1 %v5492_v13  ;;  %v808_v39 = vcombine.high %v21_v38, %v21_v38  ;;  %v815_v40 = vrot.slane %v21_v38, %v6003_v35  ;;  %v5517_v53 = vld [vmem:[%s7191_s1 + $0x1f0] sm:$0xff]   ;;  %v5521_v59 = vld [vmem:[%s7191_s1 + $0x1e8] sm:$0xff]   ;;  %v5524_v62 = vld [vmem:[%s7191_s1 + $0x160] sm:$0xff]  }
   0xf   :  { %v5518_v55 = vld [vmem:[%s7191_s1 + $0x130] sm:$0xff]   ;;  %v5522_v60 = vld [vmem:[%s7191_s1 + $0x128] sm:$0xff]   ;;  %v5525_v63 = vld [vmem:[%s7191_s1 + $0x1e0] sm:$0xff]  }
  0x10   :  { %4932 = vmatpush3.bf16.msra.mxu0 %v5493_v14  ;;  %v823_v43 = vcombine.high %v815_v40, %v815_v40  ;;  %v831_v44 = vrot.slane %v815_v40, %v6003_v35  ;;  %v6023_v45 = vrot.slane %v808_v39, %v6003_v35  ;;  %v5519_v56 = vld [vmem:[%s7191_s1 + $0x1b0] sm:$0xff]   ;;  %v5523_v61 = vld [vmem:[%s7191_s1 + $0x1a8] sm:$0xff]   ;;  %v5526_v0 = vld [vmem:[%s7191_s1 + $0x120] sm:$0xff]  }
  0x11   :  { %4954 = vmatpush3.bf16.msra.mxu1 %v5494_v15  ;;  %4933 = vmatprep.subr.bf16.mxu0 %v5495_v16  ;;  %v5527_v1 = vld [vmem:[%s7191_s1 + $0x1a0] sm:$0xff]   ;;  %v5528_v2 = vld [vmem:[%s7191_s1 + $0x158] sm:$0xff]   ;;  %v5532_v6 = vld [vmem:[%s7191_s1 + $0x150] sm:$0xff]  }
  0x12   :  { %4955 = vmatprep.subr.bf16.mxu1 %v5496_v17  ;;  %v845_v47 = vrot.slane %v823_v43, %v6003_v35  ;;  %v824_v49 = vcombine.high %v6023_v45, %v6023_v45  ;;  %v853_v50 = vcombine.high %v831_v44, %v831_v44  ;;  %v5529_v3 = vld [vmem:[%s7191_s1 + $0x1d8] sm:$0xff]   ;;  %v5533_v7 = vld [vmem:[%s7191_s1 + $0x1d0] sm:$0xff]   ;;  %v5536_v10 = vld [vmem:[%s7191_s1 + $0x148] sm:$0xff]  }
  0x13   :  { %v5530_v4 = vld [vmem:[%s7191_s1 + $0x118] sm:$0xff]   ;;  %v5534_v8 = vld [vmem:[%s7191_s1 + $0x110] sm:$0xff]   ;;  %v5537_v11 = vld [vmem:[%s7191_s1 + $0x1c8] sm:$0xff]  }
  0x14   :  { %4934 = vmatpush3.bf16.msra.mxu0 %v5497_v18  ;;  %3486 = vmatprep.mubr.bf16.mxu0 %v845_v47  ;;  %v855_v52 = vcombine.high %v845_v47, %v845_v47  ;;  %v852_v54 = vrot.slane %v824_v49, %v6003_v35  ;;  %v5531_v5 = vld [vmem:[%s7191_s1 + $0x198] sm:$0xff]   ;;  %v5535_v9 = vld [vmem:[%s7191_s1 + $0x190] sm:$0xff]   ;;  %v5538_v12 = vld [vmem:[%s7191_s1 + $0x108] sm:$0xff]   ;;  %v838_v18 = vrot.slane %v6023_v45, %v6003_v35 }
  0x15   :  { %4956 = vmatpush3.bf16.msra.mxu1 %v5498_v19  ;;  %4935 = vmatprep.subr.bf16.mxu0 %v5499_v20  ;;  %v5539_v13 = vld [vmem:[%s7191_s1 + $0x188] sm:$0xff]   ;;  %v5540_v14 = vld [vmem:[%s7191_s1 + $0x140] sm:$0xff]   ;;  %v5544_v19 = vld [vmem:[%s7191_s1 + $0x278] sm:$0xff]  }
  0x16   :  { %4957 = vmatprep.subr.bf16.mxu1 %v5500_v21  ;;  %3526 = vmatprep.mubr.bf16.mxu1 %v855_v52  ;;  %v856_v57 = vcombine.high %v852_v54, %v852_v54  ;;  %v5541_v15 = vld [vmem:[%s7191_s1 + $0x1c0] sm:$0xff]   ;;  %v5545_v20 = vld [vmem:[%s7191_s1 + $0x2f8] sm:$0xff]   ;;  %v854_v23 = vcombine.high %v838_v18, %v838_v18  ;;  %v5552_v29 = vld [vmem:[%s7191_s1 + $0x268] sm:$0xff]  }
  0x17   :  { %v5542_v16 = vld [vmem:[%s7191_s1 + $0x100] sm:$0xff]   ;;  %v5546_v21 = vld [vmem:[%s7191_s1 + $0x238] sm:$0xff]   ;;  %v5553_v30 = vld [vmem:[%s7191_s1 + $0x2e8] sm:$0xff]  }
  0x18   :  { %4936 = vmatpush3.bf16.msra.mxu0 %v5501_v25  ;;  %v5543_v17 = vld [vmem:[%s7191_s1 + $0x180] sm:$0xff]   ;;  %v5547_v22 = vld [vmem:[%s7191_s1 + $0x2b8] sm:$0xff]   ;;  %v5548_v25 = vld [vmem:[%s7191_s1 + $0x270] sm:$0xff]  }
  0x19   :  { %4958 = vmatpush3.bf16.msra.mxu1 %v5502_v26  ;;  %4937 = vmatprep.subr.bf16.mxu0 %v5503_v27  ;;  %v5549_v26 = vld [vmem:[%s7191_s1 + $0x2f0] sm:$0xff]   ;;  %v5560_v38 = vld [vmem:[%s7191_s1 + $0x258] sm:$0xff]   ;;  %v5569_v47 = vld [vmem:[%s7191_s1 + $0x2c8] sm:$0xff]  }
  0x1a   :  { %4959 = vmatprep.subr.bf16.mxu1 %v5504_v28  ;;  %v5550_v27 = vld [vmem:[%s7191_s1 + $0x230] sm:$0xff]   ;;  %v5561_v39 = vld [vmem:[%s7191_s1 + $0x2d8] sm:$0xff]   ;;  %v5571_v49 = vld [vmem:[%s7191_s1 + $0x288] sm:$0xff]  }
  0x1b   :  { %v5551_v28 = vld [vmem:[%s7191_s1 + $0x2b0] sm:$0xff]   ;;  %v5562_v40 = vld [vmem:[%s7191_s1 + $0x218] sm:$0xff]   ;;  %v5574_v52 = vld [vmem:[%s7191_s1 + $0x200] sm:$0xff]  }
  0x1c   :  { %4938 = vmatpush3.bf16.msra.mxu0 %v5505_v31  ;;  %v5554_v31 = vld [vmem:[%s7191_s1 + $0x228] sm:$0xff]   ;;  %v5565_v43 = vld [vmem:[%s7191_s1 + $0x2d0] sm:$0xff]  }
  0x1d   :  { %4960 = vmatpush3.bf16.msra.mxu1 %v5506_v32  ;;  %4939 = vmatprep.subr.bf16.mxu0 %v5507_v33  ;;  %v5555_v32 = vld [vmem:[%s7191_s1 + $0x2a8] sm:$0xff]   ;;  %v5556_v33 = vld [vmem:[%s7191_s1 + $0x260] sm:$0xff]   ;;  %v5567_v45 = vld [vmem:[%s7191_s1 + $0x290] sm:$0xff]  }
  0x1e   :  { %4961 = vmatprep.subr.bf16.mxu1 %v5508_v34  ;;  %v5557_v34 = vld [vmem:[%s7191_s1 + $0x2e0] sm:$0xff]  }
  0x20   :  { %4940 = vmatpush3.bf16.msra.mxu0 %v5509_v36  ;;  %v5558_v36 = vld [vmem:[%s7191_s1 + $0x220] sm:$0xff]  }
  0x21   :  { %4962 = vmatpush3.bf16.msra.mxu1 %v5510_v37  ;;  %4969 = vmatprep.subr.bf16.mxu0 %v5512_v41  ;;  %v5559_v37 = vld [vmem:[%s7191_s1 + $0x2a0] sm:$0xff]   ;;  %v5563_v41 = vld [vmem:[%s7191_s1 + $0x298] sm:$0xff]  }
  0x22   :  { %4991 = vmatprep.subr.bf16.mxu1 %v5513_v42  ;;  %v5564_v42 = vld [vmem:[%s7191_s1 + $0x250] sm:$0xff]  }
  0x23   :  { %3487 = vmatmul.mubr.bf16.vlgmr.msra.gmra.mxu0 %v831_v44  ;;  %v5566_v44 = vld [vmem:[%s7191_s1 + $0x210] sm:$0xff]  }
  0x24   :  { %4970 = vmatpush3.bf16.msra.mxu0 %v5514_v46  ;;  %3527 = vmatmul.mubr.bf16.vlgmr.msra.gmra.mxu1 %v853_v50  ;;  %v5568_v46 = vld [vmem:[%s7191_s1 + $0x248] sm:$0xff]   ;;  %v5572_v50 = vld [vmem:[%s7191_s1 + $0x240] sm:$0xff]  }
  0x25   :  { %4971 = vmatprep.subr.bf16.mxu0 %v5516_v51  ;;  %4992 = vmatpush3.bf16.msra.mxu1 %v5515_v48  ;;  %v5570_v48 = vld [vmem:[%s7191_s1 + $0x208] sm:$0xff]   ;;  %v5573_v51 = vld [vmem:[%s7191_s1 + $0x2c0] sm:$0xff]  }
  0x26   :  { %3566 = vmatprep.mubr.bf16.mxu0 %v852_v54  ;;  %4993 = vmatprep.subr.bf16.mxu1 %v5517_v53  ;;  %v22_v53 = vld [vmem:[%s7192_s0 + $0x8] sm:$0xff]  ;;  %v5575_v54 = vld [vmem:[%s7191_s1 + $0x280] sm:$0xff]  }
  0x27   :  { %3606 = vmatprep.mubr.bf16.mxu1 %v856_v57  ;;  %v5576_v57 = vld [vmem:[%s7191_s1 + $0x378] sm:$0xff]  }
  0x28   :  { %4972 = vmatpush3.bf16.msra.mxu0 %v5518_v55  ;;  %v864_v55 = vrot.slane %v22_v53, %v6003_v35 }
  0x29   :  { %4973 = vmatprep.subr.bf16.mxu0 %v5520_v58  ;;  %4994 = vmatpush3.bf16.msra.mxu1 %v5519_v56  ;;  %v857_v56 = vcombine.high %v22_v53, %v22_v53  ;;  %v5624_v53 = vld [vmem:[%s7191_s1 + $0x4a0] sm:$0xff]  }
  0x2a   :  { %4995 = vmatprep.subr.bf16.mxu1 %v5521_v59  ;;  %v872_v58 = vcombine.high %v864_v55, %v864_v55  ;;  %v880_v59 = vrot.slane %v864_v55, %v6003_v35  ;;  %v5626_v55 = vld [vmem:[%s7191_s1 + $0x4d8] sm:$0xff]  }
  0x2c   :  { %4974 = vmatpush3.bf16.msra.mxu0 %v5522_v60  ;;  %v5577_v60 = vld [vmem:[%s7191_s1 + $0x3f8] sm:$0xff]  }
  0x2d   :  { %4975 = vmatprep.subr.bf16.mxu0 %v5524_v62  ;;  %4996 = vmatpush3.bf16.msra.mxu1 %v5523_v61  ;;  %v6229_v61 = vrot.slane %v857_v56, %v6003_v35  ;;  %v5578_v62 = vld [vmem:[%s7191_s1 + $0x338] sm:$0xff]  }
  0x2e   :  { %4997 = vmatprep.subr.bf16.mxu1 %v5525_v63  ;;  %v894_v63 = vrot.slane %v872_v58, %v6003_v35  ;;  %v5627_v56 = vld [vmem:[%s7191_s1 + $0x418] sm:$0xff]   ;;  %v5629_v58 = vld [vmem:[%s7191_s1 + $0x450] sm:$0xff]  }
  0x30   :  { %4976 = vmatpush3.bf16.msra.mxu0 %v5526_v0  ;;  %v5579_v0 = vld [vmem:[%s7191_s1 + $0x3b8] sm:$0xff]  }
  0x31   :  { %4977 = vmatprep.subr.bf16.mxu0 %v5528_v2  ;;  %4998 = vmatpush3.bf16.msra.mxu1 %v5527_v1  ;;  %v873_v1 = vcombine.high %v6229_v61, %v6229_v61  ;;  %v902_v2 = vcombine.high %v880_v59, %v880_v59 }
  0x32   :  { %4999 = vmatprep.subr.bf16.mxu1 %v5529_v3  ;;  %v5580_v3 = vld [vmem:[%s7191_s1 + $0x370] sm:$0xff]  }
  0x34   :  { %4978 = vmatpush3.bf16.msra.mxu0 %v5530_v4  ;;  %v904_v4 = vcombine.high %v894_v63, %v894_v63 }
  0x35   :  { %4979 = vmatprep.subr.bf16.mxu0 %v5532_v6  ;;  %5000 = vmatpush3.bf16.msra.mxu1 %v5531_v5  ;;  %v5581_v5 = vld [vmem:[%s7191_s1 + $0x3f0] sm:$0xff]   ;;  %v901_v6 = vrot.slane %v873_v1, %v6003_v35  ;;  %v5636_v1 = vld [vmem:[%s7191_s1 + $0x488] sm:$0xff]  }
  0x36   :  { %5001 = vmatprep.subr.bf16.mxu1 %v5533_v7  ;;  %v5582_v7 = vld [vmem:[%s7191_s1 + $0x330] sm:$0xff]  }
  0x38   :  { %4980 = vmatpush3.bf16.msra.mxu0 %v5534_v8  ;;  %v5583_v8 = vld [vmem:[%s7191_s1 + $0x3b0] sm:$0xff]  }
  0x39   :  { %4981 = vmatprep.subr.bf16.mxu0 %v5536_v10  ;;  %5002 = vmatpush3.bf16.msra.mxu1 %v5535_v9  ;;  %v905_v9 = vcombine.high %v901_v6, %v901_v6  ;;  %v5584_v10 = vld [vmem:[%s7191_s1 + $0x368] sm:$0xff]  }
  0x3a   :  { %5003 = vmatprep.subr.bf16.mxu1 %v5537_v11  ;;  %v5585_v11 = vld [vmem:[%s7191_s1 + $0x3e8] sm:$0xff]  }
  0x3c   :  { %4982 = vmatpush3.bf16.msra.mxu0 %v5538_v12  ;;  %v5586_v12 = vld [vmem:[%s7191_s1 + $0x328] sm:$0xff]  }
  0x3d   :  { %4983 = vmatprep.subr.bf16.mxu0 %v5540_v14  ;;  %5004 = vmatpush3.bf16.msra.mxu1 %v5539_v13  ;;  %v5587_v13 = vld [vmem:[%s7191_s1 + $0x3a8] sm:$0xff]   ;;  %v5588_v14 = vld [vmem:[%s7191_s1 + $0x360] sm:$0xff]  }
  0x3e   :  { %5005 = vmatprep.subr.bf16.mxu1 %v5541_v15  ;;  %v5589_v15 = vld [vmem:[%s7191_s1 + $0x3e0] sm:$0xff]  }
  0x40   :  { %4984 = vmatpush3.bf16.msra.mxu0 %v5542_v16  ;;  %v5590_v16 = vld [vmem:[%s7191_s1 + $0x320] sm:$0xff]  }
  0x41   :  { %5013 = vmatprep.subr.bf16.mxu0 %v5544_v19  ;;  %5006 = vmatpush3.bf16.msra.mxu1 %v5543_v17  ;;  %v5591_v17 = vld [vmem:[%s7191_s1 + $0x3a0] sm:$0xff]   ;;  %v5593_v19 = vld [vmem:[%s7191_s1 + $0x3d8] sm:$0xff]  }
  0x42   :  { %5035 = vmatprep.subr.bf16.mxu1 %v5545_v20  ;;  %v5594_v20 = vld [vmem:[%s7191_s1 + $0x318] sm:$0xff]  }
  0x43   :  { %3567 = vmatmul.mubr.bf16.vlgmr.msra.gmra.mxu0 %v838_v18  ;;  %v5592_v18 = vld [vmem:[%s7191_s1 + $0x358] sm:$0xff]  }
  0x44   :  { %5014 = vmatpush3.bf16.msra.mxu0 %v5546_v21  ;;  %3607 = vmatmul.mubr.bf16.vlgmr.msra.gmra.mxu1 %v854_v23  ;;  %v5595_v21 = vld [vmem:[%s7191_s1 + $0x398] sm:$0xff]   ;;  %v5597_v23 = vld [vmem:[%s7191_s1 + $0x3d0] sm:$0xff]  }
  0x45   :  { %5015 = vmatprep.subr.bf16.mxu0 %v5548_v25  ;;  %5036 = vmatpush3.bf16.msra.mxu1 %v5547_v22  ;;  %v5596_v22 = vld [vmem:[%s7191_s1 + $0x350] sm:$0xff]  }
  0x46   :  { %5037 = vmatprep.subr.bf16.mxu1 %v5549_v26  ;;  %3646 = vmatprep.mubr.bf16.mxu0 %v894_v63  ;;  %v5598_v25 = vld [vmem:[%s7191_s1 + $0x310] sm:$0xff]   ;;  %v5634_v63 = vld [vmem:[%s7191_s1 + $0x4c8] sm:$0xff]  }
  0x47   :  { %3686 = vmatprep.mubr.bf16.mxu1 %v904_v4  ;;  %v5599_v26 = vld [vmem:[%s7191_s1 + $0x390] sm:$0xff]   ;;  %v5639_v4 = vld [vmem:[%s7191_s1 + $0x400] sm:$0xff]  }
  0x48   :  { %5016 = vmatpush3.bf16.msra.mxu0 %v5550_v27  ;;  %v5600_v27 = vld [vmem:[%s7191_s1 + $0x348] sm:$0xff]  }
  0x49   :  { %5017 = vmatprep.subr.bf16.mxu0 %v5552_v29  ;;  %5038 = vmatpush3.bf16.msra.mxu1 %v5551_v28  ;;  %v5601_v28 = vld [vmem:[%s7191_s1 + $0x3c8] sm:$0xff]  }
  0x4a   :  { %5039 = vmatprep.subr.bf16.mxu1 %v5553_v30  ;;  %v5602_v29 = vld [vmem:[%s7191_s1 + $0x308] sm:$0xff]  }
  0x4b   :  { %v5603_v30 = vld [vmem:[%s7191_s1 + $0x388] sm:$0xff]  }
  0x4c   :  { %5018 = vmatpush3.bf16.msra.mxu0 %v5554_v31  ;;  %v5604_v31 = vld [vmem:[%s7191_s1 + $0x340] sm:$0xff]  }
  0x4d   :  { %5019 = vmatprep.subr.bf16.mxu0 %v5556_v33  ;;  %5040 = vmatpush3.bf16.msra.mxu1 %v5555_v32  ;;  %v5605_v32 = vld [vmem:[%s7191_s1 + $0x3c0] sm:$0xff]  }
  0x4e   :  { %5041 = vmatprep.subr.bf16.mxu1 %v5557_v34  ;;  %v5606_v33 = vld [vmem:[%s7191_s1 + $0x300] sm:$0xff]  }
  0x4f   :  { %v5607_v34 = vld [vmem:[%s7191_s1 + $0x380] sm:$0xff]  }
  0x50   :  { %5020 = vmatpush3.bf16.msra.mxu0 %v5558_v36  ;;  %v887_v36 = vrot.slane %v6229_v61, %v6003_v35  ;;  %v5632_v61 = vld [vmem:[%s7191_s1 + $0x490] sm:$0xff]  }
  0x51   :  { %5021 = vmatprep.subr.bf16.mxu0 %v5560_v38  ;;  %5042 = vmatpush3.bf16.msra.mxu1 %v5559_v37  ;;  %v5609_v37 = vld [vmem:[%s7191_s1 + $0x478] sm:$0xff]  }
  0x52   :  { %5043 = vmatprep.subr.bf16.mxu1 %v5561_v39  ;;  %v5610_v38 = vld [vmem:[%s7191_s1 + $0x4f8] sm:$0xff]  }
  0x53   :  { %v5611_v39 = vld [vmem:[%s7191_s1 + $0x438] sm:$0xff]  }
  0x54   :  { %5022 = vmatpush3.bf16.msra.mxu0 %v5562_v40  ;;  %v5612_v40 = vld [vmem:[%s7191_s1 + $0x4b8] sm:$0xff]  }
  0x55   :  { %5023 = vmatprep.subr.bf16.mxu0 %v5564_v42  ;;  %5044 = vmatpush3.bf16.msra.mxu1 %v5563_v41  ;;  %v903_v41 = vcombine.high %v887_v36, %v887_v36  ;;  %v5613_v42 = vld [vmem:[%s7191_s1 + $0x470] sm:$0xff]  }
  0x56   :  { %5045 = vmatprep.subr.bf16.mxu1 %v5565_v43  ;;  %v5614_v43 = vld [vmem:[%s7191_s1 + $0x4f0] sm:$0xff]  }
  0x58   :  { %5024 = vmatpush3.bf16.msra.mxu0 %v5566_v44  ;;  %v5615_v44 = vld [vmem:[%s7191_s1 + $0x430] sm:$0xff]  }
  0x59   :  { %5025 = vmatprep.subr.bf16.mxu0 %v5568_v46  ;;  %5046 = vmatpush3.bf16.msra.mxu1 %v5567_v45  ;;  %v5616_v45 = vld [vmem:[%s7191_s1 + $0x4b0] sm:$0xff]   ;;  %v5617_v46 = vld [vmem:[%s7191_s1 + $0x468] sm:$0xff]  }
  0x5a   :  { %5047 = vmatprep.subr.bf16.mxu1 %v5569_v47  ;;  %v5618_v47 = vld [vmem:[%s7191_s1 + $0x4e8] sm:$0xff]  }
  0x5c   :  { %5026 = vmatpush3.bf16.msra.mxu0 %v5570_v48  ;;  %v5619_v48 = vld [vmem:[%s7191_s1 + $0x428] sm:$0xff]  }
  0x5d   :  { %5027 = vmatprep.subr.bf16.mxu0 %v5572_v50  ;;  %5048 = vmatpush3.bf16.msra.mxu1 %v5571_v49  ;;  %v5620_v49 = vld [vmem:[%s7191_s1 + $0x4a8] sm:$0xff]   ;;  %v5621_v50 = vld [vmem:[%s7191_s1 + $0x460] sm:$0xff]  }
  0x5e   :  { %5049 = vmatprep.subr.bf16.mxu1 %v5573_v51  ;;  %v5622_v51 = vld [vmem:[%s7191_s1 + $0x4e0] sm:$0xff]  }
  0x60   :  { %5028 = vmatpush3.bf16.msra.mxu0 %v5574_v52  ;;  %v5623_v52 = vld [vmem:[%s7191_s1 + $0x420] sm:$0xff]  }
  0x61   :  { %5057 = vmatprep.subr.bf16.mxu0 %v5576_v57  ;;  %5050 = vmatpush3.bf16.msra.mxu1 %v5575_v54  ;;  %v5625_v54 = vld [vmem:[%s7191_s1 + $0x458] sm:$0xff]  }
  0x62   :  { %5079 = vmatprep.subr.bf16.mxu1 %v5577_v60  ;;  %v5628_v57 = vld [vmem:[%s7191_s1 + $0x498] sm:$0xff]   ;;  %v5631_v60 = vld [vmem:[%s7191_s1 + $0x410] sm:$0xff]  }
  0x63   :  { %3647 = vmatmul.mubr.bf16.vlgmr.msra.gmra.mxu0 %v880_v59  ;;  %v5630_v59 = vld [vmem:[%s7191_s1 + $0x4d0] sm:$0xff]  }
  0x64   :  { %5058 = vmatpush3.bf16.msra.mxu0 %v5578_v62  ;;  %3687 = vmatmul.mubr.bf16.vlgmr.msra.gmra.mxu1 %v902_v2  ;;  %v5633_v62 = vld [vmem:[%s7191_s1 + $0x448] sm:$0xff]   ;;  %v5637_v2 = vld [vmem:[%s7191_s1 + $0x440] sm:$0xff]  }
  0x65   :  { %5059 = vmatprep.subr.bf16.mxu0 %v5580_v3  ;;  %5080 = vmatpush3.bf16.msra.mxu1 %v5579_v0  ;;  %v5635_v0 = vld [vmem:[%s7191_s1 + $0x408] sm:$0xff]   ;;  %v5638_v3 = vld [vmem:[%s7191_s1 + $0x4c0] sm:$0xff]  }
  0x66   :  { %3726 = vmatprep.mubr.bf16.mxu0 %v901_v6  ;;  %5081 = vmatprep.subr.bf16.mxu1 %v5581_v5  ;;  %v23_v5 = vld [vmem:[%s7192_s0 + $0x10] sm:$0xff]  ;;  %v5640_v6 = vld [vmem:[%s7191_s1 + $0x480] sm:$0xff]  }
  0x67   :  { %3766 = vmatprep.mubr.bf16.mxu1 %v905_v9  ;;  %v5641_v9 = vld [vmem:[%s7191_s1 + $0x578] sm:$0xff]  }
  0x68   :  { %5060 = vmatpush3.bf16.msra.mxu0 %v5582_v7  ;;  %v913_v7 = vrot.slane %v23_v5, %v6003_v35 }
  0x69   :  { %5061 = vmatprep.subr.bf16.mxu0 %v5584_v10  ;;  %5082 = vmatpush3.bf16.msra.mxu1 %v5583_v8  ;;  %v906_v8 = vcombine.high %v23_v5, %v23_v5  ;;  %v5689_v5 = vld [vmem:[%s7191_s1 + $0x6a0] sm:$0xff]  }
  0x6a   :  { %5083 = vmatprep.subr.bf16.mxu1 %v5585_v11  ;;  %v921_v10 = vcombine.high %v913_v7, %v913_v7  ;;  %v929_v11 = vrot.slane %v913_v7, %v6003_v35  ;;  %v5691_v7 = vld [vmem:[%s7191_s1 + $0x6d8] sm:$0xff]  }
  0x6c   :  { %5062 = vmatpush3.bf16.msra.mxu0 %v5586_v12  ;;  %v5642_v12 = vld [vmem:[%s7191_s1 + $0x5f8] sm:$0xff]  }
  0x6d   :  { %5063 = vmatprep.subr.bf16.mxu0 %v5588_v14  ;;  %5084 = vmatpush3.bf16.msra.mxu1 %v5587_v13  ;;  %v6435_v13 = vrot.slane %v906_v8, %v6003_v35  ;;  %v5643_v14 = vld [vmem:[%s7191_s1 + $0x538] sm:$0xff]  }
  0x6e   :  { %5085 = vmatprep.subr.bf16.mxu1 %v5589_v15  ;;  %v943_v15 = vrot.slane %v921_v10, %v6003_v35  ;;  %v5692_v8 = vld [vmem:[%s7191_s1 + $0x618] sm:$0xff]   ;;  %v5694_v10 = vld [vmem:[%s7191_s1 + $0x650] sm:$0xff]  }
  0x70   :  { %5064 = vmatpush3.bf16.msra.mxu0 %v5590_v16  ;;  %v5644_v16 = vld [vmem:[%s7191_s1 + $0x5b8] sm:$0xff]  }
  0x71   :  { %5065 = vmatprep.subr.bf16.mxu0 %v5592_v18  ;;  %5086 = vmatpush3.bf16.msra.mxu1 %v5591_v17  ;;  %v922_v17 = vcombine.high %v6435_v13, %v6435_v13  ;;  %v951_v18 = vcombine.high %v929_v11, %v929_v11 }
  0x72   :  { %5087 = vmatprep.subr.bf16.mxu1 %v5593_v19  ;;  %v5645_v19 = vld [vmem:[%s7191_s1 + $0x570] sm:$0xff]  }
  0x74   :  { %5066 = vmatpush3.bf16.msra.mxu0 %v5594_v20  ;;  %v953_v20 = vcombine.high %v943_v15, %v943_v15 }
  0x75   :  { %5067 = vmatprep.subr.bf16.mxu0 %v5596_v22  ;;  %5088 = vmatpush3.bf16.msra.mxu1 %v5595_v21  ;;  %v5646_v21 = vld [vmem:[%s7191_s1 + $0x5f0] sm:$0xff]   ;;  %v950_v22 = vrot.slane %v922_v17, %v6003_v35  ;;  %v5701_v17 = vld [vmem:[%s7191_s1 + $0x688] sm:$0xff]  }
  0x76   :  { %5089 = vmatprep.subr.bf16.mxu1 %v5597_v23  ;;  %v5647_v23 = vld [vmem:[%s7191_s1 + $0x530] sm:$0xff]  }
  0x78   :  { %5068 = vmatpush3.bf16.msra.mxu0 %v5598_v25  ;;  %v5648_v25 = vld [vmem:[%s7191_s1 + $0x5b0] sm:$0xff]  }
  0x79   :  { %5069 = vmatprep.subr.bf16.mxu0 %v5600_v27  ;;  %5090 = vmatpush3.bf16.msra.mxu1 %v5599_v26  ;;  %v954_v26 = vcombine.high %v950_v22, %v950_v22  ;;  %v5649_v27 = vld [vmem:[%s7191_s1 + $0x568] sm:$0xff]  }
  0x7a   :  { %5091 = vmatprep.subr.bf16.mxu1 %v5601_v28  ;;  %v5650_v28 = vld [vmem:[%s7191_s1 + $0x5e8] sm:$0xff]  }
  0x7c   :  { %5070 = vmatpush3.bf16.msra.mxu0 %v5602_v29  ;;  %v5651_v29 = vld [vmem:[%s7191_s1 + $0x528] sm:$0xff]  }
  0x7d   :  { %5071 = vmatprep.subr.bf16.mxu0 %v5604_v31  ;;  %5092 = vmatpush3.bf16.msra.mxu1 %v5603_v30  ;;  %v5652_v30 = vld [vmem:[%s7191_s1 + $0x5a8] sm:$0xff]   ;;  %v5653_v31 = vld [vmem:[%s7191_s1 + $0x560] sm:$0xff]  }
  0x7e   :  { %5093 = vmatprep.subr.bf16.mxu1 %v5605_v32  ;;  %v5654_v32 = vld [vmem:[%s7191_s1 + $0x5e0] sm:$0xff]  }
  0x80   :  { %5072 = vmatpush3.bf16.msra.mxu0 %v5606_v33  ;;  %v5655_v33 = vld [vmem:[%s7191_s1 + $0x520] sm:$0xff]  }
  0x81   :  { %5101 = vmatprep.subr.bf16.mxu0 %v5609_v37  ;;  %5094 = vmatpush3.bf16.msra.mxu1 %v5607_v34  ;;  %v5656_v34 = vld [vmem:[%s7191_s1 + $0x5a0] sm:$0xff]   ;;  %v5658_v37 = vld [vmem:[%s7191_s1 + $0x5d8] sm:$0xff]  }
  0x82   :  { %5123 = vmatprep.subr.bf16.mxu1 %v5610_v38  ;;  %v5659_v38 = vld [vmem:[%s7191_s1 + $0x518] sm:$0xff]  }
  0x83   :  { %3727 = vmatmul.mubr.bf16.vlgmr.msra.gmra.mxu0 %v887_v36  ;;  %v5657_v36 = vld [vmem:[%s7191_s1 + $0x558] sm:$0xff]  }
  0x84   :  { %5102 = vmatpush3.bf16.msra.mxu0 %v5611_v39  ;;  %3767 = vmatmul.mubr.bf16.vlgmr.msra.gmra.mxu1 %v903_v41  ;;  %v5660_v39 = vld [vmem:[%s7191_s1 + $0x598] sm:$0xff]   ;;  %v5662_v41 = vld [vmem:[%s7191_s1 + $0x5d0] sm:$0xff]  }
  0x85   :  { %5103 = vmatprep.subr.bf16.mxu0 %v5613_v42  ;;  %5124 = vmatpush3.bf16.msra.mxu1 %v5612_v40  ;;  %v5661_v40 = vld [vmem:[%s7191_s1 + $0x550] sm:$0xff]  }
  0x86   :  { %5125 = vmatprep.subr.bf16.mxu1 %v5614_v43  ;;  %3806 = vmatprep.mubr.bf16.mxu0 %v943_v15  ;;  %v5663_v42 = vld [vmem:[%s7191_s1 + $0x510] sm:$0xff]   ;;  %v5699_v15 = vld [vmem:[%s7191_s1 + $0x6c8] sm:$0xff]  }
  0x87   :  { %3846 = vmatprep.mubr.bf16.mxu1 %v953_v20  ;;  %v5664_v43 = vld [vmem:[%s7191_s1 + $0x590] sm:$0xff]   ;;  %v5704_v20 = vld [vmem:[%s7191_s1 + $0x600] sm:$0xff]  }
  0x88   :  { %5104 = vmatpush3.bf16.msra.mxu0 %v5615_v44  ;;  %v5665_v44 = vld [vmem:[%s7191_s1 + $0x548] sm:$0xff]  }
  0x89   :  { %5105 = vmatprep.subr.bf16.mxu0 %v5617_v46  ;;  %5126 = vmatpush3.bf16.msra.mxu1 %v5616_v45  ;;  %v5666_v45 = vld [vmem:[%s7191_s1 + $0x5c8] sm:$0xff]  }
  0x8a   :  { %5127 = vmatprep.subr.bf16.mxu1 %v5618_v47  ;;  %v5667_v46 = vld [vmem:[%s7191_s1 + $0x508] sm:$0xff]  }
  0x8b   :  { %v5668_v47 = vld [vmem:[%s7191_s1 + $0x588] sm:$0xff]  }
  0x8c   :  { %5106 = vmatpush3.bf16.msra.mxu0 %v5619_v48  ;;  %v5669_v48 = vld [vmem:[%s7191_s1 + $0x540] sm:$0xff]  }
  0x8d   :  { %5107 = vmatprep.subr.bf16.mxu0 %v5621_v50  ;;  %5128 = vmatpush3.bf16.msra.mxu1 %v5620_v49  ;;  %v5670_v49 = vld [vmem:[%s7191_s1 + $0x5c0] sm:$0xff]  }
  0x8e   :  { %5129 = vmatprep.subr.bf16.mxu1 %v5622_v51  ;;  %v5671_v50 = vld [vmem:[%s7191_s1 + $0x500] sm:$0xff]  }
  0x8f   :  { %v5672_v51 = vld [vmem:[%s7191_s1 + $0x580] sm:$0xff]  }
  0x90   :  { %5108 = vmatpush3.bf16.msra.mxu0 %v5623_v52  ;;  %v936_v52 = vrot.slane %v6435_v13, %v6003_v35  ;;  %v5697_v13 = vld [vmem:[%s7191_s1 + $0x690] sm:$0xff]  }
  0x91   :  { %5109 = vmatprep.subr.bf16.mxu0 %v5625_v54  ;;  %5130 = vmatpush3.bf16.msra.mxu1 %v5624_v53  ;;  %v5674_v53 = vld [vmem:[%s7191_s1 + $0x678] sm:$0xff]  }
  0x92   :  { %5131 = vmatprep.subr.bf16.mxu1 %v5626_v55  ;;  %v5675_v54 = vld [vmem:[%s7191_s1 + $0x6f8] sm:$0xff]  }
  0x93   :  { %v5676_v55 = vld [vmem:[%s7191_s1 + $0x638] sm:$0xff]  }
  0x94   :  { %5110 = vmatpush3.bf16.msra.mxu0 %v5627_v56  ;;  %v5677_v56 = vld [vmem:[%s7191_s1 + $0x6b8] sm:$0xff]  }
  0x95   :  { %5111 = vmatprep.subr.bf16.mxu0 %v5629_v58  ;;  %5132 = vmatpush3.bf16.msra.mxu1 %v5628_v57  ;;  %v952_v57 = vcombine.high %v936_v52, %v936_v52  ;;  %v5678_v58 = vld [vmem:[%s7191_s1 + $0x670] sm:$0xff]  }
  0x96   :  { %5133 = vmatprep.subr.bf16.mxu1 %v5630_v59  ;;  %v5679_v59 = vld [vmem:[%s7191_s1 + $0x6f0] sm:$0xff]  }
  0x98   :  { %5112 = vmatpush3.bf16.msra.mxu0 %v5631_v60  ;;  %v5680_v60 = vld [vmem:[%s7191_s1 + $0x630] sm:$0xff]  }
  0x99   :  { %5113 = vmatprep.subr.bf16.mxu0 %v5633_v62  ;;  %5134 = vmatpush3.bf16.msra.mxu1 %v5632_v61  ;;  %v5681_v61 = vld [vmem:[%s7191_s1 + $0x6b0] sm:$0xff]   ;;  %v5682_v62 = vld [vmem:[%s7191_s1 + $0x668] sm:$0xff]  }
  0x9a   :  { %5135 = vmatprep.subr.bf16.mxu1 %v5634_v63  ;;  %v5683_v63 = vld [vmem:[%s7191_s1 + $0x6e8] sm:$0xff]  }
  0x9c   :  { %5114 = vmatpush3.bf16.msra.mxu0 %v5635_v0  ;;  %v5684_v0 = vld [vmem:[%s7191_s1 + $0x628] sm:$0xff]  }
  0x9d   :  { %5115 = vmatprep.subr.bf16.mxu0 %v5637_v2  ;;  %5136 = vmatpush3.bf16.msra.mxu1 %v5636_v1  ;;  %v5685_v1 = vld [vmem:[%s7191_s1 + $0x6a8] sm:$0xff]   ;;  %v5686_v2 = vld [vmem:[%s7191_s1 + $0x660] sm:$0xff]  }
  0x9e   :  { %5137 = vmatprep.subr.bf16.mxu1 %v5638_v3  ;;  %v5687_v3 = vld [vmem:[%s7191_s1 + $0x6e0] sm:$0xff]  }
  0xa0   :  { %5116 = vmatpush3.bf16.msra.mxu0 %v5639_v4  ;;  %v5688_v4 = vld [vmem:[%s7191_s1 + $0x620] sm:$0xff]  }
  0xa1   :  { %5145 = vmatprep.subr.bf16.mxu0 %v5641_v9  ;;  %5138 = vmatpush3.bf16.msra.mxu1 %v5640_v6  ;;  %v5690_v6 = vld [vmem:[%s7191_s1 + $0x658] sm:$0xff]  }
  0xa2   :  { %5167 = vmatprep.subr.bf16.mxu1 %v5642_v12  ;;  %v5693_v9 = vld [vmem:[%s7191_s1 + $0x698] sm:$0xff]   ;;  %v5696_v12 = vld [vmem:[%s7191_s1 + $0x610] sm:$0xff]  }
  0xa3   :  { %3807 = vmatmul.mubr.bf16.vlgmr.msra.gmra.mxu0 %v929_v11  ;;  %v5695_v11 = vld [vmem:[%s7191_s1 + $0x6d0] sm:$0xff]  }
  0xa4   :  { %5146 = vmatpush3.bf16.msra.mxu0 %v5643_v14  ;;  %3847 = vmatmul.mubr.bf16.vlgmr.msra.gmra.mxu1 %v951_v18  ;;  %v5698_v14 = vld [vmem:[%s7191_s1 + $0x648] sm:$0xff]   ;;  %v5702_v18 = vld [vmem:[%s7191_s1 + $0x640] sm:$0xff]  }
  0xa5   :  { %5147 = vmatprep.subr.bf16.mxu0 %v5645_v19  ;;  %5168 = vmatpush3.bf16.msra.mxu1 %v5644_v16  ;;  %v5700_v16 = vld [vmem:[%s7191_s1 + $0x608] sm:$0xff]   ;;  %v5703_v19 = vld [vmem:[%s7191_s1 + $0x6c0] sm:$0xff]  }
  0xa6   :  { %3886 = vmatprep.mubr.bf16.mxu0 %v950_v22  ;;  %5169 = vmatprep.subr.bf16.mxu1 %v5646_v21  ;;  %v24_v21 = vld [vmem:[%s7192_s0 + $0x18] sm:$0xff] }
  0xa7   :  { %3926 = vmatprep.mubr.bf16.mxu1 %v954_v26  ;;  %v962_v22 = vrot.slane %v24_v21, %v6003_v35  ;;  %v5705_v26 = vld [vmem:[%s7191_s1 + $0x680] sm:$0xff]  }
  0xa8   :  { %5148 = vmatpush3.bf16.msra.mxu0 %v5647_v23  ;;  %v5706_v23 = vld [vmem:[%s7191_s1 + $0x778] sm:$0xff]  }
  0xa9   :  { %5149 = vmatprep.subr.bf16.mxu0 %v5649_v27  ;;  %5170 = vmatpush3.bf16.msra.mxu1 %v5648_v25  ;;  %v955_v25 = vcombine.high %v24_v21, %v24_v21  ;;  %v970_v27 = vcombine.high %v962_v22, %v962_v22  ;;  %v5742_v21 = vld [vmem:[%s7191_s1 + $0x8b8] sm:$0xff]  }
  0xaa   :  { %5171 = vmatprep.subr.bf16.mxu1 %v5650_v28  ;;  %v978_v28 = vrot.slane %v962_v22, %v6003_v35 }
  0xac   :  { %5150 = vmatpush3.bf16.msra.mxu0 %v5651_v29  ;;  %v5707_v29 = vld [vmem:[%s7191_s1 + $0x7f8] sm:$0xff]  }
  0xad   :  { %5151 = vmatprep.subr.bf16.mxu0 %v5653_v31  ;;  %5172 = vmatpush3.bf16.msra.mxu1 %v5652_v30  ;;  %v6641_v30 = vrot.slane %v955_v25, %v6003_v35  ;;  %v5708_v31 = vld [vmem:[%s7191_s1 + $0x738] sm:$0xff]  }
  0xae   :  { %5173 = vmatprep.subr.bf16.mxu1 %v5654_v32  ;;  %v992_v32 = vrot.slane %v970_v27, %v6003_v35  ;;  %v5745_v27 = vld [vmem:[%s7191_s1 + $0x830] sm:$0xff]  }
  0xb0   :  { %5152 = vmatpush3.bf16.msra.mxu0 %v5655_v33  ;;  %v5709_v33 = vld [vmem:[%s7191_s1 + $0x7b8] sm:$0xff]  }
  0xb1   :  { %5153 = vmatprep.subr.bf16.mxu0 %v5657_v36  ;;  %5174 = vmatpush3.bf16.msra.mxu1 %v5656_v34  ;;  %v971_v34 = vcombine.high %v6641_v30, %v6641_v30  ;;  %v1000_v36 = vcombine.high %v978_v28, %v978_v28 }
  0xb2   :  { %5175 = vmatprep.subr.bf16.mxu1 %v5658_v37  ;;  %v5710_v37 = vld [vmem:[%s7191_s1 + $0x770] sm:$0xff]  }
  0xb4   :  { %5154 = vmatpush3.bf16.msra.mxu0 %v5659_v38  ;;  %v1002_v38 = vcombine.high %v992_v32, %v992_v32 }
  0xb5   :  { %5155 = vmatprep.subr.bf16.mxu0 %v5661_v40  ;;  %5176 = vmatpush3.bf16.msra.mxu1 %v5660_v39  ;;  %v4531_v40 = vld [vmem:[%s7193_s2] ss:$0 sm:$0xff] }
  0xb6   :  { %5177 = vmatprep.subr.bf16.mxu1 %v5662_v41  ;;  %v5711_v41 = vld [vmem:[%s7191_s1 + $0x7f0] sm:$0xff]  }
  0xb8   :  { %5156 = vmatpush3.bf16.msra.mxu0 %v5663_v42  ;;  %v999_v42 = vrot.slane %v971_v34, %v6003_v35 }
  0xb9   :  { %5157 = vmatprep.subr.bf16.mxu0 %v5665_v44  ;;  %5178 = vmatpush3.bf16.msra.mxu1 %v5664_v43  ;;  %v5712_v43 = vld [vmem:[%s7191_s1 + $0x730] sm:$0xff]  }
  0xba   :  { %5179 = vmatprep.subr.bf16.mxu1 %v5666_v45 }
  0xbc   :  { %5158 = vmatpush3.bf16.msra.mxu0 %v5667_v46  ;;  %v5713_v46 = vld [vmem:[%s7191_s1 + $0x7b0] sm:$0xff]  }
  0xbd   :  { %5159 = vmatprep.subr.bf16.mxu0 %v5669_v48  ;;  %5180 = vmatpush3.bf16.msra.mxu1 %v5668_v47  ;;  %v1003_v47 = vcombine.high %v999_v42, %v999_v42 }
  0xbe   :  { %5181 = vmatprep.subr.bf16.mxu1 %v5670_v49  ;;  %v5714_v49 = vld [vmem:[%s7191_s1 + $0x768] sm:$0xff]  }
  0xc0   :  { %5160 = vmatpush3.bf16.msra.mxu0 %v5671_v50 }
  0xc1   :  { %5189 = vmatprep.subr.bf16.mxu0 %v5674_v53  ;;  %5182 = vmatpush3.bf16.msra.mxu1 %v5672_v51 }
  0xc2   :  { %5211 = vmatprep.subr.bf16.mxu1 %v5675_v54 }
  0xc3   :  { %3887 = vmatmul.mubr.bf16.vlgmr.msra.gmra.mxu0 %v936_v52  ;;  %v5715_v52 = vld [vmem:[%s7191_s1 + $0x7e8] sm:$0xff]  }
  0xc4   :  { %5190 = vmatpush3.bf16.msra.mxu0 %v5676_v55  ;;  %3927 = vmatmul.mubr.bf16.vlgmr.msra.gmra.mxu1 %v952_v57  ;;  %v5716_v55 = vld [vmem:[%s7191_s1 + $0x728] sm:$0xff]  }
  0xc5   :  { %5191 = vmatprep.subr.bf16.mxu0 %v5678_v58  ;;  %5212 = vmatpush3.bf16.msra.mxu1 %v5677_v56  ;;  %v5717_v58 = vld [vmem:[%s7191_s1 + $0x7a8] sm:$0xff]  }
  0xc6   :  { %5213 = vmatprep.subr.bf16.mxu1 %v5679_v59  ;;  %3966 = vmatprep.mubr.bf16.mxu0 %v992_v32  ;;  %v5747_v32 = vld [vmem:[%s7191_s1 + $0x868] sm:$0xff]  }
  0xc7   :  { %4006 = vmatprep.mubr.bf16.mxu1 %v1002_v38 }
  0xc8   :  { %5192 = vmatpush3.bf16.msra.mxu0 %v5680_v60  ;;  %v5718_v60 = vld [vmem:[%s7191_s1 + $0x760] sm:$0xff]  }
  0xc9   :  { %5193 = vmatprep.subr.bf16.mxu0 %v5682_v62  ;;  %5214 = vmatpush3.bf16.msra.mxu1 %v5681_v61  ;;  %v5719_v62 = vld [vmem:[%s7191_s1 + $0x7e0] sm:$0xff]  }
  0xca   :  { %5215 = vmatprep.subr.bf16.mxu1 %v5683_v63  ;;  %v5720_v63 = vld [vmem:[%s7191_s1 + $0x720] sm:$0xff]  }
  0xcc   :  { %5194 = vmatpush3.bf16.msra.mxu0 %v5684_v0  ;;  %v5721_v0 = vld [vmem:[%s7191_s1 + $0x7a0] sm:$0xff]  }
  0xcd   :  { %5195 = vmatprep.subr.bf16.mxu0 %v5686_v2  ;;  %5216 = vmatpush3.bf16.msra.mxu1 %v5685_v1  ;;  %v5722_v1 = vld [vmem:[%s7191_s1 + $0x758] sm:$0xff]  }
  0xce   :  { %5217 = vmatprep.subr.bf16.mxu1 %v5687_v3  ;;  %v5723_v2 = vld [vmem:[%s7191_s1 + $0x7d8] sm:$0xff]  }
  0xcf   :  { %v5724_v3 = vld [vmem:[%s7191_s1 + $0x718] sm:$0xff]  }
  0xd0   :  { %5196 = vmatpush3.bf16.msra.mxu0 %v5688_v4  ;;  %v5725_v4 = vld [vmem:[%s7191_s1 + $0x798] sm:$0xff]  }
  0xd1   :  { %5197 = vmatprep.subr.bf16.mxu0 %v5690_v6  ;;  %5218 = vmatpush3.bf16.msra.mxu1 %v5689_v5  ;;  %v5726_v5 = vld [vmem:[%s7191_s1 + $0x750] sm:$0xff]  }
  0xd2   :  { %5219 = vmatprep.subr.bf16.mxu1 %v5691_v7  ;;  %v5727_v6 = vld [vmem:[%s7191_s1 + $0x7d0] sm:$0xff]  }
  0xd3   :  { %v5728_v7 = vld [vmem:[%s7191_s1 + $0x710] sm:$0xff]  }
  0xd4   :  { %5198 = vmatpush3.bf16.msra.mxu0 %v5692_v8  ;;  %v5729_v8 = vld [vmem:[%s7191_s1 + $0x790] sm:$0xff]  }
  0xd5   :  { %5199 = vmatprep.subr.bf16.mxu0 %v5694_v10  ;;  %5220 = vmatpush3.bf16.msra.mxu1 %v5693_v9  ;;  %v5730_v9 = vld [vmem:[%s7191_s1 + $0x748] sm:$0xff]  }
  0xd6   :  { %5221 = vmatprep.subr.bf16.mxu1 %v5695_v11  ;;  %v5731_v10 = vld [vmem:[%s7191_s1 + $0x7c8] sm:$0xff]  }
  0xd7   :  { %v5732_v11 = vld [vmem:[%s7191_s1 + $0x708] sm:$0xff]  }
  0xd8   :  { %5200 = vmatpush3.bf16.msra.mxu0 %v5696_v12  ;;  %v5733_v12 = vld [vmem:[%s7191_s1 + $0x788] sm:$0xff]  }
  0xd9   :  { %5201 = vmatprep.subr.bf16.mxu0 %v5698_v14  ;;  %5222 = vmatpush3.bf16.msra.mxu1 %v5697_v13  ;;  %v5734_v13 = vld [vmem:[%s7191_s1 + $0x740] sm:$0xff]  }
  0xda   :  { %5223 = vmatprep.subr.bf16.mxu1 %v5699_v15  ;;  %v5735_v14 = vld [vmem:[%s7191_s1 + $0x7c0] sm:$0xff]  }
  0xdb   :  { %v5736_v15 = vld [vmem:[%s7191_s1 + $0x700] sm:$0xff]  }
  0xdc   :  { %5202 = vmatpush3.bf16.msra.mxu0 %v5700_v16  ;;  %v5737_v16 = vld [vmem:[%s7191_s1 + $0x780] sm:$0xff]  }
  0xdd   :  { %5203 = vmatprep.subr.bf16.mxu0 %v5702_v18  ;;  %5224 = vmatpush3.bf16.msra.mxu1 %v5701_v17  ;;  %v985_v17 = vrot.slane %v6641_v30, %v6003_v35  ;;  %v5739_v18 = vld [vmem:[%s7191_s1 + $0x878] sm:$0xff]   ;;  %v5746_v30 = vld [vmem:[%s7191_s1 + $0x8b0] sm:$0xff]  }
  0xde   :  { %5225 = vmatprep.subr.bf16.mxu1 %v5703_v19  ;;  %v5740_v19 = vld [vmem:[%s7191_s1 + $0x8f8] sm:$0xff]  }
  0xdf   :  { %v1001_v22 = vcombine.high %v985_v17, %v985_v17 }
  0xe0   :  { %5204 = vmatpush3.bf16.msra.mxu0 %v5704_v20  ;;  %v5741_v20 = vld [vmem:[%s7191_s1 + $0x838] sm:$0xff]  }
  0xe1   :  { %5233 = vmatprep.subr.bf16.mxu0 %v5706_v23  ;;  %5226 = vmatpush3.bf16.msra.mxu1 %v5705_v26  ;;  %v5743_v23 = vld [vmem:[%s7191_s1 + $0x870] sm:$0xff]  }
  0xe2   :  { %5255 = vmatprep.subr.bf16.mxu1 %v5707_v29  ;;  %v5744_v26 = vld [vmem:[%s7191_s1 + $0x8f0] sm:$0xff]  }
  0xe3   :  { %v4941_v39 = vpop.f32.mrf.mxu0  ;;  %3967 = vmatmul.mubr.bf16.vlgmr.msra.gmra.mxu0 %v978_v28 }
  0xe4   :  { %v4963_v44 = vpop.f32.mrf.mxu1  ;;  %5234 = vmatpush3.bf16.msra.mxu0 %v5708_v31  ;;  %4007 = vmatmul.mubr.bf16.vlgmr.msra.gmra.mxu1 %v1000_v36  ;;  %v5748_v36 = vld [vmem:[%s7191_s1 + $0x8e8] sm:$0xff]  }
  0xe5   :  { %v4942_v45 = vpop.f32.mrf.mxu0  ;;  %5235 = vmatprep.subr.bf16.mxu0 %v5710_v37  ;;  %5256 = vmatpush3.bf16.msra.mxu1 %v5709_v33 }
  0xe6   :  { %v4943_v48 = vadd.f32 %v4942_v45, %v4941_v39  ;;  %v4964_v50 = vpop.f32.mrf.mxu1  ;;  %4046 = vmatprep.mubr.bf16.mxu0 %v999_v42  ;;  %5257 = vmatprep.subr.bf16.mxu1 %v5711_v41  ;;  %v5749_v39 = vld [vmem:[%s7191_s1 + $0x828] sm:$0xff]  }
  0xe7   :  { %v4944_v51 = vpop.f32.mrf.mxu0  ;;  %v4965_v54 = vadd.f32 %v4964_v50, %v4963_v44  ;;  %4086 = vmatprep.mubr.bf16.mxu1 %v1003_v47  ;;  %v5750_v42 = vld [vmem:[%s7191_s1 + $0x8a8] sm:$0xff]   ;;  %v5751_v44 = vld [vmem:[%s7191_s1 + $0x860] sm:$0xff]   ;;  %v5756_v50 = vld [vmem:[%s7191_s1 + $0x8d8] sm:$0xff]  }
  0xe8   :  { %v3489_v53 = vadd.f32 %v4943_v48, %v4531_v40  ;;  %v4966_v56 = vpop.f32.mrf.mxu1  ;;  %5236 = vmatpush3.bf16.msra.mxu0 %v5712_v43  ;;  %v5753_v47 = vld [vmem:[%s7191_s1 + $0x820] sm:$0xff]   ;;  %v5757_v51 = vld [vmem:[%s7191_s1 + $0x818] sm:$0xff]  }
  0xe9   :  { %v4945_v57 = vpop.f32.mrf.mxu0  ;;  %5237 = vmatprep.subr.bf16.mxu0 %v5714_v49  ;;  %5258 = vmatpush3.bf16.msra.mxu1 %v5713_v46  ;;  %v5752_v46 = vld [vmem:[%s7191_s1 + $0x8e0] sm:$0xff]   ;;  %v5755_v49 = vld [vmem:[%s7191_s1 + $0x858] sm:$0xff]   ;;  %v5762_v56 = vld [vmem:[%s7191_s1 + $0x890] sm:$0xff]  }
  0xea   :  { %v6680_v59 = vadd.f32 %v4965_v54, %v3489_v53  ;;  %v4967_v61 = vpop.f32.mrf.mxu1  ;;  %5259 = vmatprep.subr.bf16.mxu1 %v5715_v52  ;;  %v5754_v48 = vld [vmem:[%s7191_s1 + $0x8a0] sm:$0xff]   ;;  %v5758_v52 = vld [vmem:[%s7191_s1 + $0x898] sm:$0xff]   ;;  %v5759_v53 = vld [vmem:[%s7191_s1 + $0x850] sm:$0xff]  }
  0xeb   :  { %v5760_v54 = vld [vmem:[%s7191_s1 + $0x8d0] sm:$0xff]   ;;  %v5763_v57 = vld [vmem:[%s7191_s1 + $0x848] sm:$0xff]   ;;  %v5767_v61 = vld [vmem:[%s7191_s1 + $0x840] sm:$0xff]  }
  0xec   :  { %5238 = vmatpush3.bf16.msra.mxu0 %v5716_v55  ;;  %v5761_v55 = vld [vmem:[%s7191_s1 + $0x810] sm:$0xff]  }
  0xed   :  { %5239 = vmatprep.subr.bf16.mxu0 %v5718_v60  ;;  %5260 = vmatpush3.bf16.msra.mxu1 %v5717_v58  ;;  %v5764_v58 = vld [vmem:[%s7191_s1 + $0x8c8] sm:$0xff]  }
  0xee   :  { %5261 = vmatprep.subr.bf16.mxu1 %v5719_v62  ;;  %v5766_v60 = vld [vmem:[%s7191_s1 + $0x888] sm:$0xff]   ;;  %v5768_v62 = vld [vmem:[%s7191_s1 + $0x8c0] sm:$0xff]  }
  0xf0   :  { %5240 = vmatpush3.bf16.msra.mxu0 %v5720_v63  ;;  %v5769_v63 = vld [vmem:[%s7191_s1 + $0x800] sm:$0xff]  }
  0xf1   :  { %5241 = vmatprep.subr.bf16.mxu0 %v5722_v1  ;;  %5262 = vmatpush3.bf16.msra.mxu1 %v5721_v0  ;;  %v25_v0 = vld [vmem:[%s7192_s0 + $0x20] sm:$0xff] }
  0xf2   :  { %5263 = vmatprep.subr.bf16.mxu1 %v5723_v2  ;;  %v5770_v1 = vld [vmem:[%s7191_s1 + $0x880] sm:$0xff]   ;;  %v1011_v2 = vrot.slane %v25_v0, %v6003_v35 }
  0xf4   :  { %5242 = vmatpush3.bf16.msra.mxu0 %v5724_v3  ;;  %v1004_v3 = vcombine.high %v25_v0, %v25_v0 }
  0xf5   :  { %5243 = vmatprep.subr.bf16.mxu0 %v5726_v5  ;;  %5264 = vmatpush3.bf16.msra.mxu1 %v5725_v4  ;;  %v5771_v4 = vld [vmem:[%s7191_s1 + $0x978] sm:$0xff]   ;;  %v1019_v5 = vcombine.high %v1011_v2, %v1011_v2 }
  0xf6   :  { %5265 = vmatprep.subr.bf16.mxu1 %v5727_v6  ;;  %v1027_v6 = vrot.slane %v1011_v2, %v6003_v35 }
  0xf8   :  { %5244 = vmatpush3.bf16.msra.mxu0 %v5728_v7  ;;  %v5772_v7 = vld [vmem:[%s7191_s1 + $0x9f8] sm:$0xff]  }
  0xf9   :  { %5245 = vmatprep.subr.bf16.mxu0 %v5730_v9  ;;  %5266 = vmatpush3.bf16.msra.mxu1 %v5729_v8  ;;  %v6855_v8 = vrot.slane %v1004_v3, %v6003_v35  ;;  %v5773_v9 = vld [vmem:[%s7191_s1 + $0x938] sm:$0xff]   ;;  %v5809_v3 = vld [vmem:[%s7191_s1 + $0xaf0] sm:$0xff]  }
  0xfa   :  { %5267 = vmatprep.subr.bf16.mxu1 %v5731_v10  ;;  %v1041_v10 = vrot.slane %v1019_v5, %v6003_v35 }
  0xfc   :  { %5246 = vmatpush3.bf16.msra.mxu0 %v5732_v11  ;;  %v5774_v11 = vld [vmem:[%s7191_s1 + $0x9b8] sm:$0xff]  }
  0xfd   :  { %5247 = vmatprep.subr.bf16.mxu0 %v5734_v13  ;;  %5268 = vmatpush3.bf16.msra.mxu1 %v5733_v12  ;;  %v1020_v12 = vcombine.high %v6855_v8, %v6855_v8  ;;  %v1049_v13 = vcombine.high %v1027_v6, %v1027_v6 }
  0xfe   :  { %5269 = vmatprep.subr.bf16.mxu1 %v5735_v14  ;;  %v5775_v14 = vld [vmem:[%s7191_s1 + $0x970] sm:$0xff]  }
 0x100   :  { %5248 = vmatpush3.bf16.msra.mxu0 %v5736_v15  ;;  %v1051_v15 = vcombine.high %v1041_v10, %v1041_v10 }
 0x101   :  { %5277 = vmatprep.subr.bf16.mxu0 %v5739_v18  ;;  %5270 = vmatpush3.bf16.msra.mxu1 %v5737_v16  ;;  %v1048_v18 = vrot.slane %v1020_v12, %v6003_v35  ;;  %v5813_v12 = vld [vmem:[%s7191_s1 + $0xae8] sm:$0xff]  }
 0x102   :  { %5299 = vmatprep.subr.bf16.mxu1 %v5740_v19  ;;  %v5777_v19 = vld [vmem:[%s7191_s1 + $0x930] sm:$0xff]  }
 0x103   :  { %v4985_v25 = vpop.f32.mrf.mxu0  ;;  %4047 = vmatmul.mubr.bf16.vlgmr.msra.gmra.mxu0 %v985_v17  ;;  %v5776_v17 = vld [vmem:[%s7191_s1 + $0x9f0] sm:$0xff]  }
 0x104   :  { %v5007_v28 = vpop.f32.mrf.mxu1  ;;  %5278 = vmatpush3.bf16.msra.mxu0 %v5741_v20  ;;  %4087 = vmatmul.mubr.bf16.vlgmr.msra.gmra.mxu1 %v1001_v22  ;;  %v5778_v22 = vld [vmem:[%s7191_s1 + $0x9b0] sm:$0xff]  }
 0x105   :  { %v4986_v29 = vpop.f32.mrf.mxu0  ;;  %5279 = vmatprep.subr.bf16.mxu0 %v5743_v23  ;;  %5300 = vmatpush3.bf16.msra.mxu1 %v5742_v21  ;;  %v1052_v23 = vcombine.high %v1048_v18, %v1048_v18 }
 0x106   :  { %v4987_v31 = vadd.f32 %v4986_v29, %v4985_v25  ;;  %v5008_v33 = vpop.f32.mrf.mxu1  ;;  %5301 = vmatprep.subr.bf16.mxu1 %v5744_v26  ;;  %4126 = vmatprep.mubr.bf16.mxu0 %v1041_v10  ;;  %v5779_v26 = vld [vmem:[%s7191_s1 + $0x968] sm:$0xff]  }
 0x107   :  { %v4988_v34 = vpop.f32.mrf.mxu0  ;;  %v5009_v38 = vadd.f32 %v5008_v33, %v5007_v28  ;;  %4166 = vmatprep.mubr.bf16.mxu1 %v1051_v15  ;;  %v5780_v29 = vld [vmem:[%s7191_s1 + $0x9e8] sm:$0xff]  }
 0x108   :  { %v3569_v37 = vadd.f32 %v4987_v31, %v6680_v59  ;;  %v5010_v40 = vpop.f32.mrf.mxu1  ;;  %5280 = vmatpush3.bf16.msra.mxu0 %v5745_v27  ;;  %v5765_v59 = vld [vmem:[%s7191_s1 + $0x808] sm:$0xff]  }
 0x109   :  { %v4989_v41 = vpop.f32.mrf.mxu0  ;;  %5281 = vmatprep.subr.bf16.mxu0 %v5747_v32  ;;  %5302 = vmatpush3.bf16.msra.mxu1 %v5746_v30  ;;  %v5781_v32 = vld [vmem:[%s7191_s1 + $0x928] sm:$0xff]   ;;  %v5784_v40 = vld [vmem:[%s7191_s1 + $0x9e0] sm:$0xff]  }
 0x10a   :  { %v6781_v43 = vadd.f32 %v5009_v38, %v3569_v37  ;;  %v5011_v45 = vpop.f32.mrf.mxu1  ;;  %5303 = vmatprep.subr.bf16.mxu1 %v5748_v36  ;;  %v5782_v36 = vld [vmem:[%s7191_s1 + $0x9a8] sm:$0xff]   ;;  %v5783_v38 = vld [vmem:[%s7191_s1 + $0x960] sm:$0xff]  }
 0x10b   :  { %v5785_v41 = vld [vmem:[%s7191_s1 + $0x920] sm:$0xff]   ;;  %v5789_v45 = vld [vmem:[%s7191_s1 + $0x918] sm:$0xff]   ;;  %v5814_v15 = vld [vmem:[%s7191_s1 + $0xa28] sm:$0xff]  }
 0x10c   :  { %5282 = vmatpush3.bf16.msra.mxu0 %v5749_v39 }
 0x10d   :  { %5283 = vmatprep.subr.bf16.mxu0 %v5751_v44  ;;  %5304 = vmatpush3.bf16.msra.mxu1 %v5750_v42  ;;  %v5786_v42 = vld [vmem:[%s7191_s1 + $0x9a0] sm:$0xff]   ;;  %v5788_v44 = vld [vmem:[%s7191_s1 + $0x9d8] sm:$0xff]  }
 0x10e   :  { %5305 = vmatprep.subr.bf16.mxu1 %v5752_v46  ;;  %v5790_v46 = vld [vmem:[%s7191_s1 + $0x998] sm:$0xff]  }
 0x110   :  { %5284 = vmatpush3.bf16.msra.mxu0 %v5753_v47  ;;  %v5791_v47 = vld [vmem:[%s7191_s1 + $0x950] sm:$0xff]  }
 0x111   :  { %5285 = vmatprep.subr.bf16.mxu0 %v5755_v49  ;;  %5306 = vmatpush3.bf16.msra.mxu1 %v5754_v48  ;;  %v5792_v48 = vld [vmem:[%s7191_s1 + $0x9d0] sm:$0xff]  }
 0x112   :  { %5307 = vmatprep.subr.bf16.mxu1 %v5756_v50  ;;  %v5793_v49 = vld [vmem:[%s7191_s1 + $0x910] sm:$0xff]  }
 0x113   :  { %v5794_v50 = vld [vmem:[%s7191_s1 + $0x990] sm:$0xff]  }
 0x114   :  { %5286 = vmatpush3.bf16.msra.mxu0 %v5757_v51  ;;  %v5795_v51 = vld [vmem:[%s7191_s1 + $0x948] sm:$0xff]  }
 0x115   :  { %5287 = vmatprep.subr.bf16.mxu0 %v5759_v53  ;;  %5308 = vmatpush3.bf16.msra.mxu1 %v5758_v52  ;;  %v5796_v52 = vld [vmem:[%s7191_s1 + $0x9c8] sm:$0xff]  }
 0x116   :  { %5309 = vmatprep.subr.bf16.mxu1 %v5760_v54  ;;  %v5797_v53 = vld [vmem:[%s7191_s1 + $0x908] sm:$0xff]  }
 0x117   :  { %v5798_v54 = vld [vmem:[%s7191_s1 + $0x988] sm:$0xff]  }
 0x118   :  { %5288 = vmatpush3.bf16.msra.mxu0 %v5761_v55  ;;  %v5799_v55 = vld [vmem:[%s7191_s1 + $0x940] sm:$0xff]  }
 0x119   :  { %5289 = vmatprep.subr.bf16.mxu0 %v5763_v57  ;;  %5310 = vmatpush3.bf16.msra.mxu1 %v5762_v56  ;;  %v5800_v56 = vld [vmem:[%s7191_s1 + $0x9c0] sm:$0xff]  }
 0x11a   :  { %5311 = vmatprep.subr.bf16.mxu1 %v5764_v58  ;;  %v5801_v57 = vld [vmem:[%s7191_s1 + $0x900] sm:$0xff]  }
 0x11b   :  { %v5802_v58 = vld [vmem:[%s7191_s1 + $0x980] sm:$0xff]  }
 0x11c   :  { %5290 = vmatpush3.bf16.msra.mxu0 %v5765_v59  ;;  %v1034_v59 = vrot.slane %v6855_v8, %v6003_v35 }
 0x11d   :  { %5291 = vmatprep.subr.bf16.mxu0 %v5767_v61  ;;  %5312 = vmatpush3.bf16.msra.mxu1 %v5766_v60  ;;  %v5804_v60 = vld [vmem:[%s7191_s1 + $0xa78] sm:$0xff]  }
 0x11e   :  { %5313 = vmatprep.subr.bf16.mxu1 %v5768_v62  ;;  %v5805_v61 = vld [vmem:[%s7191_s1 + $0xaf8] sm:$0xff]   ;;  %v1050_v0 = vcombine.high %v1034_v59, %v1034_v59 }
 0x11f   :  { %v5806_v62 = vld [vmem:[%s7191_s1 + $0xa38] sm:$0xff]  }
 0x120   :  { %5292 = vmatpush3.bf16.msra.mxu0 %v5769_v63  ;;  %v5807_v63 = vld [vmem:[%s7191_s1 + $0xab8] sm:$0xff]  }
 0x121   :  { %5321 = vmatprep.subr.bf16.mxu0 %v5771_v4  ;;  %5314 = vmatpush3.bf16.msra.mxu1 %v5770_v1  ;;  %v5808_v1 = vld [vmem:[%s7191_s1 + $0xa70] sm:$0xff]  }
 0x122   :  { %5343 = vmatprep.subr.bf16.mxu1 %v5772_v7  ;;  %v5810_v4 = vld [vmem:[%s7191_s1 + $0xa30] sm:$0xff]  }
 0x123   :  { %v5029_v16 = vpop.f32.mrf.mxu0  ;;  %4127 = vmatmul.mubr.bf16.vlgmr.msra.gmra.mxu0 %v1027_v6  ;;  %v5811_v7 = vld [vmem:[%s7191_s1 + $0xab0] sm:$0xff]  }
 0x124   :  { %v5051_v20 = vpop.f32.mrf.mxu1  ;;  %5322 = vmatpush3.bf16.msra.mxu0 %v5773_v9  ;;  %4167 = vmatmul.mubr.bf16.vlgmr.msra.gmra.mxu1 %v1049_v13  ;;  %v5812_v9 = vld [vmem:[%s7191_s1 + $0xa68] sm:$0xff]  }
 0x125   :  { %v5030_v21 = vpop.f32.mrf.mxu0  ;;  %5323 = vmatprep.subr.bf16.mxu0 %v5775_v14  ;;  %5344 = vmatpush3.bf16.msra.mxu1 %v5774_v11 }
 0x126   :  { %v5031_v25 = vadd.f32 %v5030_v21, %v5029_v16  ;;  %v5052_v27 = vpop.f32.mrf.mxu1  ;;  %4206 = vmatprep.mubr.bf16.mxu0 %v1048_v18  ;;  %5345 = vmatprep.subr.bf16.mxu1 %v5776_v17  ;;  %v5815_v18 = vld [vmem:[%s7191_s1 + $0xaa8] sm:$0xff]  }
 0x127   :  { %v5032_v28 = vpop.f32.mrf.mxu0  ;;  %v5053_v31 = vadd.f32 %v5052_v27, %v5051_v20  ;;  %4246 = vmatprep.mubr.bf16.mxu1 %v1052_v23  ;;  %v5816_v20 = vld [vmem:[%s7191_s1 + $0xa60] sm:$0xff]   ;;  %v5821_v27 = vld [vmem:[%s7191_s1 + $0xad8] sm:$0xff]  }
 0x128   :  { %v3649_v30 = vadd.f32 %v5031_v25, %v6781_v43  ;;  %v5054_v33 = vpop.f32.mrf.mxu1  ;;  %5324 = vmatpush3.bf16.msra.mxu0 %v5777_v19  ;;  %v5787_v43 = vld [vmem:[%s7191_s1 + $0x958] sm:$0xff]   ;;  %v5818_v23 = vld [vmem:[%s7191_s1 + $0xa20] sm:$0xff]  }
 0x129   :  { %v5033_v34 = vpop.f32.mrf.mxu0  ;;  %5325 = vmatprep.subr.bf16.mxu0 %v5779_v26  ;;  %5346 = vmatpush3.bf16.msra.mxu1 %v5778_v22  ;;  %v5817_v22 = vld [vmem:[%s7191_s1 + $0xae0] sm:$0xff]   ;;  %v5820_v26 = vld [vmem:[%s7191_s1 + $0xa58] sm:$0xff]   ;;  %v5827_v33 = vld [vmem:[%s7191_s1 + $0xa90] sm:$0xff]  }
 0x12a   :  { %v6892_v37 = vadd.f32 %v5053_v31, %v3649_v30  ;;  %v5055_v39 = vpop.f32.mrf.mxu1  ;;  %5347 = vmatprep.subr.bf16.mxu1 %v5780_v29  ;;  %v5819_v25 = vld [vmem:[%s7191_s1 + $0xaa0] sm:$0xff]   ;;  %v5822_v28 = vld [vmem:[%s7191_s1 + $0xa18] sm:$0xff]   ;;  %v5824_v30 = vld [vmem:[%s7191_s1 + $0xa50] sm:$0xff]  }
 0x12b   :  { %v5823_v29 = vld [vmem:[%s7191_s1 + $0xa98] sm:$0xff]   ;;  %v5825_v31 = vld [vmem:[%s7191_s1 + $0xad0] sm:$0xff]   ;;  %v5828_v34 = vld [vmem:[%s7191_s1 + $0xa48] sm:$0xff]  }
 0x12c   :  { %5326 = vmatpush3.bf16.msra.mxu0 %v5781_v32  ;;  %v5826_v32 = vld [vmem:[%s7191_s1 + $0xa10] sm:$0xff]   ;;  %v5832_v39 = vld [vmem:[%s7191_s1 + $0xa40] sm:$0xff]  }
 0x12d   :  { %5327 = vmatprep.subr.bf16.mxu0 %v5783_v38  ;;  %5348 = vmatpush3.bf16.msra.mxu1 %v5782_v36  ;;  %v5829_v36 = vld [vmem:[%s7191_s1 + $0xac8] sm:$0xff]  }
 0x12e   :  { %5349 = vmatprep.subr.bf16.mxu1 %v5784_v40  ;;  %v5831_v38 = vld [vmem:[%s7191_s1 + $0xa88] sm:$0xff]   ;;  %v5833_v40 = vld [vmem:[%s7191_s1 + $0xac0] sm:$0xff]  }
 0x130   :  { %5328 = vmatpush3.bf16.msra.mxu0 %v5785_v41  ;;  %v5834_v41 = vld [vmem:[%s7191_s1 + $0xa00] sm:$0xff]  }
 0x131   :  { %5329 = vmatprep.subr.bf16.mxu0 %v5787_v43  ;;  %5350 = vmatpush3.bf16.msra.mxu1 %v5786_v42  ;;  %v26_v42 = vld [vmem:[%s7192_s0 + $0x28] sm:$0xff] }
 0x132   :  { %5351 = vmatprep.subr.bf16.mxu1 %v5788_v44  ;;  %v1060_v43 = vrot.slane %v26_v42, %v6003_v35  ;;  %v5836_v44 = vld [vmem:[%s7191_s1 + $0xb78] sm:$0xff]  }
 0x134   :  { %5330 = vmatpush3.bf16.msra.mxu0 %v5789_v45  ;;  %v1053_v45 = vcombine.high %v26_v42, %v26_v42 }
 0x135   :  { %5331 = vmatprep.subr.bf16.mxu0 %v5791_v47  ;;  %5352 = vmatpush3.bf16.msra.mxu1 %v5790_v46  ;;  %v5835_v46 = vld [vmem:[%s7191_s1 + $0xa80] sm:$0xff]   ;;  %v1068_v47 = vcombine.high %v1060_v43, %v1060_v43 }
 0x136   :  { %5353 = vmatprep.subr.bf16.mxu1 %v5792_v48  ;;  %v1076_v48 = vrot.slane %v1060_v43, %v6003_v35 }
 0x138   :  { %5332 = vmatpush3.bf16.msra.mxu0 %v5793_v49  ;;  %v5837_v49 = vld [vmem:[%s7191_s1 + $0xbf8] sm:$0xff]  }
 0x139   :  { %5333 = vmatprep.subr.bf16.mxu0 %v5795_v51  ;;  %5354 = vmatpush3.bf16.msra.mxu1 %v5794_v50  ;;  %v7067_v50 = vrot.slane %v1053_v45, %v6003_v35  ;;  %v1090_v51 = vrot.slane %v1068_v47, %v6003_v35 }
 0x13a   :  { %5355 = vmatprep.subr.bf16.mxu1 %v5796_v52  ;;  %v5838_v52 = vld [vmem:[%s7191_s1 + $0xb38] sm:$0xff]  }
 0x13c   :  { %5334 = vmatpush3.bf16.msra.mxu0 %v5797_v53  ;;  %v1069_v53 = vcombine.high %v7067_v50, %v7067_v50 }
 0x13d   :  { %5335 = vmatprep.subr.bf16.mxu0 %v5799_v55  ;;  %5356 = vmatpush3.bf16.msra.mxu1 %v5798_v54  ;;  %v1098_v55 = vcombine.high %v1076_v48, %v1076_v48 }
 0x13e   :  { %5357 = vmatprep.subr.bf16.mxu1 %v5800_v56  ;;  %v5840_v56 = vld [vmem:[%s7191_s1 + $0xb70] sm:$0xff]  }
 0x140   :  { %5336 = vmatpush3.bf16.msra.mxu0 %v5801_v57  ;;  %v1100_v57 = vcombine.high %v1090_v51, %v1090_v51 }
 0x141   :  { %5365 = vmatprep.subr.bf16.mxu0 %v5804_v60  ;;  %5358 = vmatpush3.bf16.msra.mxu1 %v5802_v58  ;;  %v5839_v58 = vld [vmem:[%s7191_s1 + $0xbb8] sm:$0xff]  }
 0x142   :  { %5387 = vmatprep.subr.bf16.mxu1 %v5805_v61 }
 0x143   :  { %v5073_v2 = vpop.f32.mrf.mxu0  ;;  %4207 = vmatmul.mubr.bf16.vlgmr.msra.gmra.mxu0 %v1034_v59  ;;  %v1097_v59 = vrot.slane %v1069_v53, %v6003_v35 }
 0x144   :  { %v5095_v5 = vpop.f32.mrf.mxu1  ;;  %5366 = vmatpush3.bf16.msra.mxu0 %v5806_v62  ;;  %4247 = vmatmul.mubr.bf16.vlgmr.msra.gmra.mxu1 %v1050_v0  ;;  %v5841_v62 = vld [vmem:[%s7191_s1 + $0xbf0] sm:$0xff]  }
 0x145   :  { %v5074_v6 = vpop.f32.mrf.mxu0  ;;  %5367 = vmatprep.subr.bf16.mxu0 %v5808_v1  ;;  %5388 = vmatpush3.bf16.msra.mxu1 %v5807_v63  ;;  %v5842_v0 = vld [vmem:[%s7191_s1 + $0xb30] sm:$0xff]   ;;  %v1101_v1 = vcombine.high %v1097_v59, %v1097_v59 }
 0x146   :  { %v5075_v8 = vadd.f32 %v5074_v6, %v5073_v2  ;;  %v5096_v10 = vpop.f32.mrf.mxu1  ;;  %5389 = vmatprep.subr.bf16.mxu1 %v5809_v3  ;;  %4286 = vmatprep.mubr.bf16.mxu0 %v1090_v51 }
 0x147   :  { %v5076_v11 = vpop.f32.mrf.mxu0  ;;  %v5097_v14 = vadd.f32 %v5096_v10, %v5095_v5  ;;  %4326 = vmatprep.mubr.bf16.mxu1 %v1100_v57  ;;  %v5845_v10 = vld [vmem:[%s7191_s1 + $0xbe8] sm:$0xff]  }
 0x148   :  { %v3729_v13 = vadd.f32 %v5075_v8, %v6892_v37  ;;  %v5098_v16 = vpop.f32.mrf.mxu1  ;;  %5368 = vmatpush3.bf16.msra.mxu0 %v5810_v4  ;;  %v5830_v37 = vld [vmem:[%s7191_s1 + $0xa08] sm:$0xff]  }
 0x149   :  { %v5077_v17 = vpop.f32.mrf.mxu0  ;;  %5369 = vmatprep.subr.bf16.mxu0 %v5812_v9  ;;  %5390 = vmatpush3.bf16.msra.mxu1 %v5811_v7  ;;  %v5844_v4 = vld [vmem:[%s7191_s1 + $0xb68] sm:$0xff]   ;;  %v5843_v7 = vld [vmem:[%s7191_s1 + $0xbb0] sm:$0xff]   ;;  %v5849_v16 = vld [vmem:[%s7191_s1 + $0xbe0] sm:$0xff]  }
 0x14a   :  { %v6993_v19 = vadd.f32 %v5097_v14, %v3729_v13  ;;  %v5099_v21 = vpop.f32.mrf.mxu1  ;;  %5391 = vmatprep.subr.bf16.mxu1 %v5813_v12  ;;  %v5846_v12 = vld [vmem:[%s7191_s1 + $0xb28] sm:$0xff]   ;;  %v5848_v14 = vld [vmem:[%s7191_s1 + $0xb60] sm:$0xff]  }
 0x14b   :  { %v5850_v17 = vld [vmem:[%s7191_s1 + $0xb20] sm:$0xff]   ;;  %v5854_v21 = vld [vmem:[%s7191_s1 + $0xb18] sm:$0xff]  }
 0x14c   :  { %5370 = vmatpush3.bf16.msra.mxu0 %v5814_v15  ;;  %v5847_v15 = vld [vmem:[%s7191_s1 + $0xba8] sm:$0xff]  }
 0x14d   :  { %5371 = vmatprep.subr.bf16.mxu0 %v5816_v20  ;;  %5392 = vmatpush3.bf16.msra.mxu1 %v5815_v18  ;;  %v5852_v18 = vld [vmem:[%s7191_s1 + $0xb58] sm:$0xff]  }
 0x14e   :  { %5393 = vmatprep.subr.bf16.mxu1 %v5817_v22  ;;  %v5853_v20 = vld [vmem:[%s7191_s1 + $0xbd8] sm:$0xff]   ;;  %v5856_v22 = vld [vmem:[%s7191_s1 + $0xb50] sm:$0xff]  }
 0x150   :  { %5372 = vmatpush3.bf16.msra.mxu0 %v5818_v23  ;;  %v5855_v23 = vld [vmem:[%s7191_s1 + $0xb98] sm:$0xff]  }
 0x151   :  { %5373 = vmatprep.subr.bf16.mxu0 %v5820_v26  ;;  %5394 = vmatpush3.bf16.msra.mxu1 %v5819_v25  ;;  %v5857_v25 = vld [vmem:[%s7191_s1 + $0xbd0] sm:$0xff]  }
 0x152   :  { %5395 = vmatprep.subr.bf16.mxu1 %v5821_v27  ;;  %v5858_v26 = vld [vmem:[%s7191_s1 + $0xb10] sm:$0xff]   ;;  %v5860_v27 = vld [vmem:[%s7191_s1 + $0xb48] sm:$0xff]  }
 0x154   :  { %5374 = vmatpush3.bf16.msra.mxu0 %v5822_v28  ;;  %v5859_v28 = vld [vmem:[%s7191_s1 + $0xb90] sm:$0xff]  }
 0x155   :  { %5375 = vmatprep.subr.bf16.mxu0 %v5824_v30  ;;  %5396 = vmatpush3.bf16.msra.mxu1 %v5823_v29  ;;  %v5861_v29 = vld [vmem:[%s7191_s1 + $0xbc8] sm:$0xff]  }
 0x156   :  { %5397 = vmatprep.subr.bf16.mxu1 %v5825_v31  ;;  %v5862_v30 = vld [vmem:[%s7191_s1 + $0xb08] sm:$0xff]   ;;  %v5864_v31 = vld [vmem:[%s7191_s1 + $0xb40] sm:$0xff]  }
 0x158   :  { %5376 = vmatpush3.bf16.msra.mxu0 %v5826_v32  ;;  %v5863_v32 = vld [vmem:[%s7191_s1 + $0xb88] sm:$0xff]  }
 0x159   :  { %5377 = vmatprep.subr.bf16.mxu0 %v5828_v34  ;;  %5398 = vmatpush3.bf16.msra.mxu1 %v5827_v33  ;;  %v5865_v33 = vld [vmem:[%s7191_s1 + $0xbc0] sm:$0xff]  }
 0x15a   :  { %5399 = vmatprep.subr.bf16.mxu1 %v5829_v36  ;;  %v5866_v34 = vld [vmem:[%s7191_s1 + $0xb00] sm:$0xff]   ;;  %v1083_v36 = vrot.slane %v7067_v50, %v6003_v35 }
 0x15c   :  { %5378 = vmatpush3.bf16.msra.mxu0 %v5830_v37  ;;  %v5867_v37 = vld [vmem:[%s7191_s1 + $0xb80] sm:$0xff]  }
 0x15d   :  { %5379 = vmatprep.subr.bf16.mxu0 %v5832_v39  ;;  %5400 = vmatpush3.bf16.msra.mxu1 %v5831_v38  ;;  %v1099_v39 = vcombine.high %v1083_v36, %v1083_v36 }
 0x15e   :  { %5401 = vmatprep.subr.bf16.mxu1 %v5833_v40 }
 0x160   :  { %5380 = vmatpush3.bf16.msra.mxu0 %v5834_v41 }
 0x161   :  { %5409 = vmatprep.subr.bf16.mxu0 %v5836_v44  ;;  %5402 = vmatpush3.bf16.msra.mxu1 %v5835_v46 }
 0x162   :  { %5431 = vmatprep.subr.bf16.mxu1 %v5837_v49 }
 0x163   :  { %v5117_v54 = vpop.f32.mrf.mxu0  ;;  %4287 = vmatmul.mubr.bf16.vlgmr.msra.gmra.mxu0 %v1076_v48 }
 0x164   :  { %v5139_v60 = vpop.f32.mrf.mxu1  ;;  %5410 = vmatpush3.bf16.msra.mxu0 %v5838_v52  ;;  %4327 = vmatmul.mubr.bf16.vlgmr.msra.gmra.mxu1 %v1098_v55 }
 0x165   :  { %v5118_v61 = vpop.f32.mrf.mxu0  ;;  %5411 = vmatprep.subr.bf16.mxu0 %v5840_v56  ;;  %5432 = vmatpush3.bf16.msra.mxu1 %v5839_v58 }
 0x166   :  { %v5119_v63 = vadd.f32 %v5118_v61, %v5117_v54  ;;  %v5140_v2 = vpop.f32.mrf.mxu1  ;;  %4366 = vmatprep.mubr.bf16.mxu0 %v1097_v59  ;;  %5433 = vmatprep.subr.bf16.mxu1 %v5841_v62  ;;  %v5880_v62 = vmov 0.0  }
 0x167   :  { %v5120_v3 = vpop.f32.mrf.mxu0  ;;  %v5141_v6 = vadd.f32 %v5140_v2, %v5139_v60  ;;  %4406 = vmatprep.mubr.bf16.mxu1 %v1101_v1  ;;  %v5871_v1 = vld [vmem:[%s7194_s3 + $0x18] sm:$0xff]  }
 0x168   :  { %v3809_v5 = vadd.f32 %v5119_v63, %v6993_v19  ;;  %v5142_v8 = vpop.f32.mrf.mxu1  ;;  %5412 = vmatpush3.bf16.msra.mxu0 %v5842_v0  ;;  %v5851_v19 = vld [vmem:[%s7191_s1 + $0xba0] sm:$0xff]   ;;  %v5869_v63 = vld [vmem:[%s7194_s3 + $0x28] sm:$0xff]  }
 0x169   :  { %v5121_v9 = vpop.f32.mrf.mxu0  ;;  %5413 = vmatprep.subr.bf16.mxu0 %v5844_v4  ;;  %5434 = vmatpush3.bf16.msra.mxu1 %v5843_v7  ;;  %v5870_v0 = vld [vmem:[%s7194_s3 + $0x20] sm:$0xff]  }
 0x16a   :  { %v3849_v11 = vadd.f32 %v5141_v6, %v3809_v5  ;;  %v5143_v13 = vpop.f32.mrf.mxu1  ;;  %5435 = vmatprep.subr.bf16.mxu1 %v5845_v10  ;;  %v5872_v6 = vld [vmem:[%s7194_s3 + $0x10] sm:$0xff]  }
 0x16c   :  { %5414 = vmatpush3.bf16.msra.mxu0 %v5846_v12 }
 0x16d   :  { %5415 = vmatprep.subr.bf16.mxu0 %v5848_v14  ;;  %5436 = vmatpush3.bf16.msra.mxu1 %v5847_v15  ;;  %v5873_v14 = vld [vmem:[%s7194_s3 + $0x8] sm:$0xff]  }
 0x16e   :  { %5437 = vmatprep.subr.bf16.mxu1 %v5849_v16  ;;  %v5874_v16 = vld [vmem:[%s7194_s3] sm:$0xff]  }
 0x170   :  { %5416 = vmatpush3.bf16.msra.mxu0 %v5850_v17 }
 0x171   :  { %5417 = vmatprep.subr.bf16.mxu0 %v5852_v18  ;;  %5438 = vmatpush3.bf16.msra.mxu1 %v5851_v19 }
 0x172   :  { %5439 = vmatprep.subr.bf16.mxu1 %v5853_v20 }
 0x174   :  { %5418 = vmatpush3.bf16.msra.mxu0 %v5854_v21 }
 0x175   :  { %5419 = vmatprep.subr.bf16.mxu0 %v5856_v22  ;;  %5440 = vmatpush3.bf16.msra.mxu1 %v5855_v23 }
 0x176   :  { %5441 = vmatprep.subr.bf16.mxu1 %v5857_v25 }
 0x178   :  { %5420 = vmatpush3.bf16.msra.mxu0 %v5858_v26 }
 0x179   :  { %5421 = vmatprep.subr.bf16.mxu0 %v5860_v27  ;;  %5442 = vmatpush3.bf16.msra.mxu1 %v5859_v28 }
 0x17a   :  { %5443 = vmatprep.subr.bf16.mxu1 %v5861_v29 }
 0x17c   :  { %5422 = vmatpush3.bf16.msra.mxu0 %v5862_v30 }
 0x17d   :  { %5423 = vmatprep.subr.bf16.mxu0 %v5864_v31  ;;  %5444 = vmatpush3.bf16.msra.mxu1 %v5863_v32 }
 0x17e   :  { %5445 = vmatprep.subr.bf16.mxu1 %v5865_v33 }
 0x180   :  { %5424 = vmatpush3.bf16.msra.mxu0 %v5866_v34 }
 0x181   :  { %5446 = vmatpush3.bf16.msra.mxu1 %v5867_v37  ;;  %5460 = vmatprep.subr.bf16.mxu0 %v5880_v62 }
 0x183   :  { %v5161_v38 = vpop.f32.mrf.mxu0  ;;  %4367 = vmatmul.mubr.bf16.vlgmr.msra.gmra.mxu0 %v1083_v36 }
 0x184   :  { %v5183_v40 = vpop.f32.mrf.mxu1  ;;  %4407 = vmatmul.mubr.bf16.vlgmr.msra.gmra.mxu1 %v1099_v39  ;;  %5461 = vmatpush3.bf16.msra.mxu0 %v5869_v63 }
 0x185   :  { %v5162_v41 = vpop.f32.mrf.mxu0  ;;  %5462 = vmatprep.subr.bf16.mxu0 %v5880_v62  ;;  %5472 = vmatprep.mubr.msk.bf16.mxu0 %vm5881_vm0, %v5880_v62 }
 0x186   :  { %v5163_v42 = vadd.f32 %v5162_v41, %v5161_v38  ;;  %v5184_v43 = vpop.f32.mrf.mxu1 }
 0x187   :  { %v5164_v44 = vpop.f32.mrf.mxu0  ;;  %v5185_v46 = vadd.f32 %v5184_v43, %v5183_v40 }
 0x188   :  { %v3889_v45 = vadd.f32 %v5163_v42, %v3849_v11  ;;  %v5186_v35 = vpop.f32.mrf.mxu1  ;;  %5463 = vmatpush3.bf16.msra.mxu0 %v5870_v0 }
 0x189   :  { %v5165_v47 = vpop.f32.mrf.mxu0  ;;  %5464 = vmatprep.subr.bf16.mxu0 %v5880_v62 }
 0x18a   :  { %v3929_v48 = vadd.f32 %v5185_v46, %v3889_v45  ;;  %v5187_v49 = vpop.f32.mrf.mxu1 }
 0x18c   :  { %5465 = vmatpush3.bf16.msra.mxu0 %v5871_v1 }
 0x18d   :  { %5466 = vmatprep.subr.bf16.mxu0 %v5880_v62 }
 0x190   :  { %5467 = vmatpush3.bf16.msra.mxu0 %v5872_v6 }
 0x191   :  { %5468 = vmatprep.subr.bf16.mxu0 %v5880_v62 }
 0x194   :  { %5469 = vmatpush3.bf16.msra.mxu0 %v5873_v14 }
 0x195   :  { %5470 = vmatprep.subr.bf16.mxu0 %v5880_v62 }
 0x198   :  { %5471 = vmatpush3.bf16.msra.mxu0 %v5874_v16 }
 0x1a3   :  { %v5205_v50 = vpop.f32.mrf.mxu0 }
 0x1a4   :  { %v5227_v51 = vpop.f32.mrf.mxu1 }
 0x1a5   :  { %v5206_v52 = vpop.f32.mrf.mxu0 }
 0x1a6   :  { %v5207_v53 = vadd.f32 %v5206_v52, %v5205_v50  ;;  %v5228_v54 = vpop.f32.mrf.mxu1 }
 0x1a7   :  { %v5208_v55 = vpop.f32.mrf.mxu0  ;;  %v5229_v57 = vadd.f32 %v5228_v54, %v5227_v51 }
 0x1a8   :  { %v3969_v56 = vadd.f32 %v5207_v53, %v3929_v48  ;;  %v5230_v58 = vpop.f32.mrf.mxu1 }
 0x1a9   :  { %v5209_v59 = vpop.f32.mrf.mxu0 }
 0x1aa   :  { %v4009_v60 = vadd.f32 %v5229_v57, %v3969_v56  ;;  %v5231_v61 = vpop.f32.mrf.mxu1 }
 0x1c3   :  { %v5249_v2 = vpop.f32.mrf.mxu0 }
 0x1c4   :  { %v5271_v3 = vpop.f32.mrf.mxu1 }
 0x1c5   :  { %v5250_v4 = vpop.f32.mrf.mxu0 }
 0x1c6   :  { %v5251_v5 = vadd.f32 %v5250_v4, %v5249_v2  ;;  %v5272_v7 = vpop.f32.mrf.mxu1  ;;  %v4916_v4 = vld [vmem:[%s7195_s4] ss:$0 sm:$0xff] }
 0x1c7   :  { %v5252_v8 = vpop.f32.mrf.mxu0  ;;  %v5273_v10 = vadd.f32 %v5272_v7, %v5271_v3 }
 0x1c8   :  { %v4049_v9 = vadd.f32 %v5251_v5, %v4009_v60  ;;  %v5274_v11 = vpop.f32.mrf.mxu1 }
 0x1c9   :  { %v5253_v12 = vpop.f32.mrf.mxu0 }
 0x1ca   :  { %v4089_v13 = vadd.f32 %v5273_v10, %v4049_v9  ;;  %v5275_v15 = vpop.f32.mrf.mxu1 }
 0x1e3   :  { %v5293_v17 = vpop.f32.mrf.mxu0 }
 0x1e4   :  { %v5315_v18 = vpop.f32.mrf.mxu1 }
 0x1e5   :  { %v5294_v19 = vpop.f32.mrf.mxu0 }
 0x1e6   :  { %v5295_v20 = vadd.f32 %v5294_v19, %v5293_v17  ;;  %v5316_v21 = vpop.f32.mrf.mxu1 }
 0x1e7   :  { %v5296_v22 = vpop.f32.mrf.mxu0  ;;  %v5317_v25 = vadd.f32 %v5316_v21, %v5315_v18 }
 0x1e8   :  { %v4129_v23 = vadd.f32 %v5295_v20, %v4089_v13  ;;  %v5318_v26 = vpop.f32.mrf.mxu1  ;;  %v4516_v13 = vand.u32 127, %v812_v24 }
 0x1e9   :  { %v5297_v27 = vpop.f32.mrf.mxu0 }
 0x1ea   :  { %v4169_v28 = vadd.f32 %v5317_v25, %v4129_v23  ;;  %v5319_v29 = vpop.f32.mrf.mxu1  ;;  %vm4517_vm2 = vcmp.lt.s32.totalorder %v4516_v13, 6 }
 0x203   :  { %v5337_v30 = vpop.f32.mrf.mxu0 }
 0x204   :  { %v5359_v31 = vpop.f32.mrf.mxu1 }
 0x205   :  { %v5338_v32 = vpop.f32.mrf.mxu0 }
 0x206   :  { %v5360_v33 = vpop.f32.mrf.mxu1  ;;  %v5339_v35 = vadd.f32 %v5338_v32, %v5337_v30 }
 0x207   :  { %v5340_v34 = vpop.f32.mrf.mxu0  ;;  %v5361_v48 = vadd.f32 %v5360_v33, %v5359_v31 }
 0x208   :  { %v5362_v36 = vpop.f32.mrf.mxu1  ;;  %v4209_v47 = vadd.f32 %v5339_v35, %v4169_v28 }
 0x209   :  { %v5341_v37 = vpop.f32.mrf.mxu0 }
 0x20a   :  { %v5363_v38 = vpop.f32.mrf.mxu1  ;;  %v4249_v50 = vadd.f32 %v5361_v48, %v4209_v47 }
 0x223   :  { %v5381_v39 = vpop.f32.mrf.mxu0 }
 0x224   :  { %v5403_v40 = vpop.f32.mrf.mxu1 }
 0x225   :  { %v5382_v41 = vpop.f32.mrf.mxu0 }
 0x226   :  { %v5404_v42 = vpop.f32.mrf.mxu1  ;;  %v5383_v49 = vadd.f32 %v5382_v41, %v5381_v39 }
 0x227   :  { %v5384_v43 = vpop.f32.mrf.mxu0  ;;  %v5405_v52 = vadd.f32 %v5404_v42, %v5403_v40 }
 0x228   :  { %v5406_v44 = vpop.f32.mrf.mxu1  ;;  %v4289_v51 = vadd.f32 %v5383_v49, %v4249_v50 }
 0x229   :  { %v5385_v45 = vpop.f32.mrf.mxu0 }
 0x22a   :  { %v5407_v46 = vpop.f32.mrf.mxu1  ;;  %v4329_v56 = vadd.f32 %v5405_v52, %v4289_v51 }
 0x243   :  { %v5425_v53 = vpop.f32.mrf.mxu0 }
 0x244   :  { %v5447_v54 = vpop.f32.mrf.mxu1 }
 0x245   :  { %v5426_v55 = vpop.f32.mrf.mxu0 }
 0x246   :  { %v5427_v57 = vadd.f32 %v5426_v55, %v5425_v53  ;;  %v5448_v58 = vpop.f32.mrf.mxu1 }
 0x247   :  { %v5428_v59 = vpop.f32.mrf.mxu0  ;;  %v5449_v61 = vadd.f32 %v5448_v58, %v5447_v54 }
 0x248   :  { %v4369_v60 = vadd.f32 %v5427_v57, %v4329_v56  ;;  %v5450_v62 = vpop.f32.mrf.mxu1 }
 0x249   :  { %v5429_v63 = vpop.f32.mrf.mxu0 }
 0x24a   :  { %v4409_v0 = vadd.f32 %v5449_v61, %v4369_v60  ;;  %v5451_v1 = vpop.f32.mrf.mxu1 }
 0x24c   :  { %v4414_v2 = vmax.f32 %v4409_v0, 0.0 }
 0x24e   :  { %v4415_v3 = vpack.c.bf16 %v4414_v2, %v4414_v2 }
 0x250   :  { %5473 = vmatmul.mubr.msk.bf16.vlgmr.msra.gmra.mxu0 %vm4471_vm1, %v4415_v3 }
 0x310   :  { %v4509_v5 = vpop.f32.mrf.mxu0 }
 0x311   :  { %v4510_v6 = vadd.f32 %v4916_v4, %v4509_v5 }
 0x312   :  { %v5474_v7 = vpop.f32.mrf.mxu0 }
 0x313   :  { %v4924_v8 = vmul.f32 -1.442695, %v4510_v6 }
 0x314   :  { %v4512_v9 = vpop.f32.mrf.mxu0 }
 0x315   :  { %5875 = vpow2.f32 %v4924_v8 }
 0x316   :  { %v5475_v10 = vpop.f32.mrf.mxu0 }
 0x322   :  { %v5876_v11 = vpop.eup %5875 }
 0x323   :  { %v4521_v12 = vadd.f32 1.0, %v5876_v11 }
 0x325   :  { %5877 = vrcp.f32 %v4521_v12 }
 0x332   :  { %v5878_v14 = vpop.eup %5877 }
 0x333   :  { %v4524_v15 = vsel %vm4517_vm2, %v5878_v14, %v4510_v6 }
 0x334   :  { %4526 = vst.msk [vmem:[%s7196_s5] sm:$0x3] %vm4525_vm3, %v4524_v15 }

</bundles_post_ra>
